<compile_context>
chip_gen: v7x
topology: tpu7x:2x2x1
jax: 0.10.0
libtpu: 0.0.40
codegen_flags: <defaults>
</compile_context>

<pallas_src>
import functools

import jax
import jax.numpy as jnp
from jax import lax
from jax.experimental import pallas as pl
from jax.experimental.pallas import tpu as pltpu

_HALO = 128  # lane-aligned zero halo on each side of the flattened spatial axis


def _coordconv_kernel(x_ref, w_ref, b_ref, o_ref, g_ref, *,
                      cin, cout, kh, kw, h, w, pad):
    """One batch element of CoordConv2d (stride 1, padding = k//2, odd k).

    x_ref: (1, cin, h*w)           f32 VMEM  -- input, spatial dims flattened
    w_ref: (cout, (cin+1)*kh*kw)   f32 VMEM  -- OIHW weights, (ci, i, j) flat
    b_ref: (cout, 1)               f32 VMEM
    o_ref: (1, cout, h*w)          f32 VMEM  -- lane-dense output slab
    g_ref: (cin+1, 2*_HALO + h*w)  f32 VMEM scratch -- halo'ed flat input
    """
    hw = h * w
    cin1 = cin + 1

    # ---- flat row / column index of every output pixel (yy channel + masks) --
    flat_idx = lax.broadcasted_iota(jnp.int32, (1, hw), 1)
    if (w & (w - 1)) == 0:                       # power-of-two width: bit ops
        row_idx = flat_idx >> (w.bit_length() - 1)
        col_idx = flat_idx & (w - 1)
    else:
        row_idx = flat_idx // w
        col_idx = flat_idx - row_idx * w

    # ---- AddCoords fused: yy[r, c] = r / H (matches the torch AddCoords) -----
    yy = row_idx.astype(jnp.float32) * (1.0 / h)                  # (1, hw)

    # ---- build the halo'ed, flattened input in VMEM scratch -------------------
    zero_halo = jnp.zeros((cin1, _HALO), jnp.float32)
    g_ref[:, 0:_HALO] = zero_halo                                 # front halo
    g_ref[:, _HALO + hw:] = zero_halo                             # back halo
    g_ref[0:cin, _HALO:_HALO + hw] = x_ref[0]                     # real channels
    g_ref[cin:cin1, _HALO:_HALO + hw] = yy                        # coord channel

    base = _HALO - pad * w - pad
    acc = jnp.zeros((cout, hw), jnp.float32)

    for j in range(kw):                    # kernel column (W direction)
        part = jnp.zeros((cout, hw), jnp.float32)
        for i in range(kh):                # kernel row (H direction)
            start = base + i * w + j       # constant flat offset of this tap
            for ci in range(cin1):         # input channels incl. coord channel
                # one shifted window per (ci, i, j), shared by all cout
                srow = g_ref[ci:ci + 1, start:start + hw]         # (1, hw)
                t = (ci * kh + i) * kw + j
                wcol = w_ref[:, t:t + 1]                          # (cout, 1)
                part = part + wcol * srow                         # (cout, hw) FMA
        # W-direction padding: taps whose source column c + j - pad falls
        # outside [0, W) wrap across rows in the flat layout -> mask to zero.
        if j != pad:
            valid = (col_idx >= (pad - j)) & (col_idx < (w + pad - j))
            part = jnp.where(valid, part, 0.0)
        acc = acc + part

    o_ref[0] = (acc + b_ref[...]).astype(o_ref.dtype)             # unmasked vst


def coordconv2d(x, weight, bias):
    """CoordConv2d forward: AddCoords (append yy = row/H) + Conv2d(k x k,
    stride 1, padding k//2, bias).

    x: (B, C, H, W) f32, weight: (Cout, C+1, k, k) f32, bias: (Cout,) f32.
    Returns (B, Cout, H, W) f32.
    """
    B, C, H, W = x.shape
    Cout, Cin1, KH, KW = weight.shape
    assert Cin1 == C + 1, "weight must have C+1 input channels (coord channel)"
    assert KH == KW and KH % 2 == 1, "odd square kernels / stride 1 only"
    pad = KH // 2
    HW = H * W
    assert HW % 128 == 0, "spatial slab must be lane-dense (H*W % 128 == 0)"
    assert pad * (W + 1) <= _HALO, "conv halo must fit in the 128-lane zero block"

    x_flat = x.reshape(B, C, HW)                    # free row-major reshape
    w_flat = weight.reshape(Cout, Cin1 * KH * KW)   # free row-major reshape
    b_col = bias.reshape(Cout, 1)

    kernel = functools.partial(
        _coordconv_kernel, cin=C, cout=Cout, kh=KH, kw=KW, h=H, w=W, pad=pad)

    flops = 2 * B * Cout * Cin1 * KH * KW * HW
    bytes_accessed = 4 * (B * C * HW + Cout * Cin1 * KH * KW + Cout + B * Cout * HW)

    out = pl.pallas_call(
        kernel,
        out_shape=jax.ShapeDtypeStruct((B, Cout, HW), x.dtype),
        grid=(B,),
        in_specs=[
            pl.BlockSpec((1, C, HW), lambda b: (b, 0, 0)),
            pl.BlockSpec((Cout, Cin1 * KH * KW), lambda b: (0, 0)),
            pl.BlockSpec((Cout, 1), lambda b: (0, 0)),
        ],
        out_specs=pl.BlockSpec((1, Cout, HW), lambda b: (b, 0, 0)),
        scratch_shapes=[pltpu.VMEM((Cin1, 2 * _HALO + HW), jnp.float32)],
        compiler_params=pltpu.CompilerParams(dimension_semantics=("parallel",)),
        cost_estimate=pl.CostEstimate(flops=flops, transcendentals=0,
                                      bytes_accessed=bytes_accessed),
    )(x_flat, w_flat, b_col)
    return out.reshape(B, Cout, H, W)


def _reference(x, weight, bias, padding):
    """Pure-JAX reference: AddCoords (yy = row/H) + lax conv + bias."""
    B, C, H, W = x.shape
    yy = (jnp.arange(H, dtype=jnp.float32) / H)[None, None, :, None]
    yy = jnp.broadcast_to(yy, (B, 1, H, W)).astype(x.dtype)
    x_aug = jnp.concatenate([x, yy], axis=1)
    out = lax.conv_general_dilated(
        x_aug, weight, window_strides=(1, 1),
        padding=[(padding, padding), (padding, padding)],
        dimension_numbers=('NCHW', 'OIHW', 'NCHW'))
    return out + bias[None, :, None, None]


if __name__ == "__main__":
    key = jax.random.PRNGKey(0)
    B, C, H, W = 2, 4, 16, 16
    Cout, KH, KW = 8, 3, 3
    Cin1 = C + 1

    kx, kw_, kb = jax.random.split(key, 3)
    x = jax.random.normal(kx, (B, C, H, W), dtype=jnp.float32)

    # deterministic PyTorch-style Conv2d init: U(-1/sqrt(fan_in), 1/sqrt(fan_in))
    fan_in = Cin1 * KH * KW
    bound = 1.0 / (fan_in ** 0.5)
    weight = jax.random.uniform(kw_, (Cout, Cin1, KH, KW), jnp.float32, -bound, bound)
    bias = jax.random.uniform(kb, (Cout,), jnp.float32, -bound, bound)

    out = coordconv2d(x, weight, bias)
    out = jax.block_until_ready(out)

    ref = _reference(x, weight, bias, padding=KH // 2)
    assert out.shape == (B, Cout, H, W), out.shape
    if not jnp.allclose(out, ref, atol=1e-4, rtol=1e-4):
        raise AssertionError("Pallas CoordConv2d does not match reference conv")
    print("KERNEL_OK")
</pallas_src>

<mosaic_0001>
module attributes {stable_mosaic.version = 11 : i64} {
  func.func @_coordconv_kernel(%arg0: i32, %arg1: memref<1x4x256xf32, #tpu.memory_space<vmem>>, %arg2: memref<8x45xf32, #tpu.memory_space<vmem>>, %arg3: memref<8x1xf32, #tpu.memory_space<vmem>>, %arg4: memref<1x8x256xf32, #tpu.memory_space<vmem>>, %arg5: memref<5x512xf32, #tpu.memory_space<vmem>>) attributes {dimension_semantics = [#tpu.dimension_semantics<parallel>], iteration_bounds = array<i64: 2>, scalar_prefetch = 0 : i64, scratch_operands = 1 : i64, tpu.core_type = #tpu.core_type<tc>, window_params = [{transform_indices = @transform_0, window_bounds = array<i64: 1, 4, 256>}, {pipeline_mode = #tpu.pipeline_mode<synchronous>, transform_indices = @transform_1, window_bounds = array<i64: 8, 45>}, {pipeline_mode = #tpu.pipeline_mode<synchronous>, transform_indices = @transform_2, window_bounds = array<i64: 8, 1>}, {transform_indices = @transform_3, window_bounds = array<i64: 1, 8, 256>}]} {
    %0 = tpu.iota {dimensions = array<i32: 1>} : vector<1x256xi32>
    %c4_i32 = arith.constant 4 : i32
    %1 = vector.broadcast %c4_i32 : i32 to vector<1x256xi32>
    %2 = arith.shrsi %0, %1 : vector<1x256xi32>
    %c15_i32 = arith.constant 15 : i32
    %3 = vector.broadcast %c15_i32 : i32 to vector<1x256xi32>
    %4 = arith.andi %0, %3 : vector<1x256xi32>
    %5 = arith.sitofp %2 : vector<1x256xi32> to vector<1x256xf32>
    %cst = arith.constant 6.250000e-02 : f32
    %6 = vector.broadcast %cst : f32 to vector<1x256xf32>
    %7 = arith.mulf %5, %6 : vector<1x256xf32>
    %cst_0 = arith.constant 0.000000e+00 : f32
    %8 = vector.broadcast %cst_0 : f32 to vector<5x128xf32>
    %c0 = arith.constant 0 : index
    %c0_1 = arith.constant 0 : index
    %9 = vector.load %arg5[%c0, %c0_1] : memref<5x512xf32, #tpu.memory_space<vmem>>, vector<5x128xf32>
    tpu.vector_store %arg5[%c0, %c0_1], %8 {strides = array<i32>} : memref<5x512xf32, #tpu.memory_space<vmem>>, vector<5x128xf32>,
    %c0_2 = arith.constant 0 : index
    %c384 = arith.constant 384 : index
    %10 = vector.load %arg5[%c0_2, %c384] : memref<5x512xf32, #tpu.memory_space<vmem>>, vector<5x128xf32>
    tpu.vector_store %arg5[%c0_2, %c384], %8 {strides = array<i32>} : memref<5x512xf32, #tpu.memory_space<vmem>>, vector<5x128xf32>,
    %c0_3 = arith.constant 0 : index
    %c0_4 = arith.constant 0 : index
    %c0_5 = arith.constant 0 : index
    %11 = vector.load %arg1[%c0_3, %c0_4, %c0_5] : memref<1x4x256xf32, #tpu.memory_space<vmem>>, vector<1x4x256xf32>
    %12 = vector.shape_cast %11 : vector<1x4x256xf32> to vector<4x256xf32>
    %c0_6 = arith.constant 0 : index
    %c128 = arith.constant 128 : index
    %13 = vector.load %arg5[%c0_6, %c128] : memref<5x512xf32, #tpu.memory_space<vmem>>, vector<4x256xf32>
    tpu.vector_store %arg5[%c0_6, %c128], %12 {strides = array<i32>} : memref<5x512xf32, #tpu.memory_space<vmem>>, vector<4x256xf32>,
    %c4 = arith.constant 4 : index
    %c128_7 = arith.constant 128 : index
    %14 = vector.load %arg5[%c4, %c128_7] : memref<5x512xf32, #tpu.memory_space<vmem>>, vector<1x256xf32>
    tpu.vector_store %arg5[%c4, %c128_7], %7 {strides = array<i32>} : memref<5x512xf32, #tpu.memory_space<vmem>>, vector<1x256xf32>,
    %cst_8 = arith.constant 0.000000e+00 : f32
    %15 = vector.broadcast %cst_8 : f32 to vector<8x256xf32>
    %cst_9 = arith.constant 0.000000e+00 : f32
    %16 = vector.broadcast %cst_9 : f32 to vector<8x256xf32>
    %c0_10 = arith.constant 0 : index
    %c111 = arith.constant 111 : index
    %17 = vector.load %arg5[%c0_10, %c111] : memref<5x512xf32, #tpu.memory_space<vmem>>, vector<1x256xf32>
    %c0_11 = arith.constant 0 : index
    %c0_12 = arith.constant 0 : index
    %18 = vector.load %arg2[%c0_11, %c0_12] : memref<8x45xf32, #tpu.memory_space<vmem>>, vector<8x1xf32>
    %19 = vector.broadcast %18 : vector<8x1xf32> to vector<8x256xf32>
    %20 = vector.broadcast %17 : vector<1x256xf32> to vector<8x256xf32>
    %21 = arith.mulf %19, %20 : vector<8x256xf32>
    %22 = arith.addf %16, %21 : vector<8x256xf32>
    %c1 = arith.constant 1 : index
    %c111_13 = arith.constant 111 : index
    %23 = vector.load %arg5[%c1, %c111_13] : memref<5x512xf32, #tpu.memory_space<vmem>>, vector<1x256xf32>
    %c0_14 = arith.constant 0 : index
    %c9 = arith.constant 9 : index
    %24 = vector.load %arg2[%c0_14, %c9] : memref<8x45xf32, #tpu.memory_space<vmem>>, vector<8x1xf32>
    %25 = vector.broadcast %24 : vector<8x1xf32> to vector<8x256xf32>
    %26 = vector.broadcast %23 : vector<1x256xf32> to vector<8x256xf32>
    %27 = arith.mulf %25, %26 : vector<8x256xf32>
    %28 = arith.addf %22, %27 : vector<8x256xf32>
    %c2 = arith.constant 2 : index
    %c111_15 = arith.constant 111 : index
    %29 = vector.load %arg5[%c2, %c111_15] : memref<5x512xf32, #tpu.memory_space<vmem>>, vector<1x256xf32>
    %c0_16 = arith.constant 0 : index
    %c18 = arith.constant 18 : index
    %30 = vector.load %arg2[%c0_16, %c18] : memref<8x45xf32, #tpu.memory_space<vmem>>, vector<8x1xf32>
    %31 = vector.broadcast %30 : vector<8x1xf32> to vector<8x256xf32>
    %32 = vector.broadcast %29 : vector<1x256xf32> to vector<8x256xf32>
    %33 = arith.mulf %31, %32 : vector<8x256xf32>
    %34 = arith.addf %28, %33 : vector<8x256xf32>
    %c3 = arith.constant 3 : index
    %c111_17 = arith.constant 111 : index
    %35 = vector.load %arg5[%c3, %c111_17] : memref<5x512xf32, #tpu.memory_space<vmem>>, vector<1x256xf32>
    %c0_18 = arith.constant 0 : index
    %c27 = arith.constant 27 : index
    %36 = vector.load %arg2[%c0_18, %c27] : memref<8x45xf32, #tpu.memory_space<vmem>>, vector<8x1xf32>
    %37 = vector.broadcast %36 : vector<8x1xf32> to vector<8x256xf32>
    %38 = vector.broadcast %35 : vector<1x256xf32> to vector<8x256xf32>
    %39 = arith.mulf %37, %38 : vector<8x256xf32>
    %40 = arith.addf %34, %39 : vector<8x256xf32>
    %c4_19 = arith.constant 4 : index
    %c111_20 = arith.constant 111 : index
    %41 = vector.load %arg5[%c4_19, %c111_20] : memref<5x512xf32, #tpu.memory_space<vmem>>, vector<1x256xf32>
    %c0_21 = arith.constant 0 : index
    %c36 = arith.constant 36 : index
    %42 = vector.load %arg2[%c0_21, %c36] : memref<8x45xf32, #tpu.memory_space<vmem>>, vector<8x1xf32>
    %43 = vector.broadcast %42 : vector<8x1xf32> to vector<8x256xf32>
    %44 = vector.broadcast %41 : vector<1x256xf32> to vector<8x256xf32>
    %45 = arith.mulf %43, %44 : vector<8x256xf32>
    %46 = arith.addf %40, %45 : vector<8x256xf32>
    %c0_22 = arith.constant 0 : index
    %c127 = arith.constant 127 : index
    %47 = vector.load %arg5[%c0_22, %c127] : memref<5x512xf32, #tpu.memory_space<vmem>>, vector<1x256xf32>
    %c0_23 = arith.constant 0 : index
    %c3_24 = arith.constant 3 : index
    %48 = vector.load %arg2[%c0_23, %c3_24] : memref<8x45xf32, #tpu.memory_space<vmem>>, vector<8x1xf32>
    %49 = vector.broadcast %48 : vector<8x1xf32> to vector<8x256xf32>
    %50 = vector.broadcast %47 : vector<1x256xf32> to vector<8x256xf32>
    %51 = arith.mulf %49, %50 : vector<8x256xf32>
    %52 = arith.addf %46, %51 : vector<8x256xf32>
    %c1_25 = arith.constant 1 : index
    %c127_26 = arith.constant 127 : index
    %53 = vector.load %arg5[%c1_25, %c127_26] : memref<5x512xf32, #tpu.memory_space<vmem>>, vector<1x256xf32>
    %c0_27 = arith.constant 0 : index
    %c12 = arith.constant 12 : index
    %54 = vector.load %arg2[%c0_27, %c12] : memref<8x45xf32, #tpu.memory_space<vmem>>, vector<8x1xf32>
    %55 = vector.broadcast %54 : vector<8x1xf32> to vector<8x256xf32>
    %56 = vector.broadcast %53 : vector<1x256xf32> to vector<8x256xf32>
    %57 = arith.mulf %55, %56 : vector<8x256xf32>
    %58 = arith.addf %52, %57 : vector<8x256xf32>
    %c2_28 = arith.constant 2 : index
    %c127_29 = arith.constant 127 : index
    %59 = vector.load %arg5[%c2_28, %c127_29] : memref<5x512xf32, #tpu.memory_space<vmem>>, vector<1x256xf32>
    %c0_30 = arith.constant 0 : index
    %c21 = arith.constant 21 : index
    %60 = vector.load %arg2[%c0_30, %c21] : memref<8x45xf32, #tpu.memory_space<vmem>>, vector<8x1xf32>
    %61 = vector.broadcast %60 : vector<8x1xf32> to vector<8x256xf32>
    %62 = vector.broadcast %59 : vector<1x256xf32> to vector<8x256xf32>
    %63 = arith.mulf %61, %62 : vector<8x256xf32>
    %64 = arith.addf %58, %63 : vector<8x256xf32>
    %c3_31 = arith.constant 3 : index
    %c127_32 = arith.constant 127 : index
    %65 = vector.load %arg5[%c3_31, %c127_32] : memref<5x512xf32, #tpu.memory_space<vmem>>, vector<1x256xf32>
    %c0_33 = arith.constant 0 : index
    %c30 = arith.constant 30 : index
    %66 = vector.load %arg2[%c0_33, %c30] : memref<8x45xf32, #tpu.memory_space<vmem>>, vector<8x1xf32>
    %67 = vector.broadcast %66 : vector<8x1xf32> to vector<8x256xf32>
    %68 = vector.broadcast %65 : vector<1x256xf32> to vector<8x256xf32>
    %69 = arith.mulf %67, %68 : vector<8x256xf32>
    %70 = arith.addf %64, %69 : vector<8x256xf32>
    %c4_34 = arith.constant 4 : index
    %c127_35 = arith.constant 127 : index
    %71 = vector.load %arg5[%c4_34, %c127_35] : memref<5x512xf32, #tpu.memory_space<vmem>>, vector<1x256xf32>
    %c0_36 = arith.constant 0 : index
    %c39 = arith.constant 39 : index
    %72 = vector.load %arg2[%c0_36, %c39] : memref<8x45xf32, #tpu.memory_space<vmem>>, vector<8x1xf32>
    %73 = vector.broadcast %72 : vector<8x1xf32> to vector<8x256xf32>
    %74 = vector.broadcast %71 : vector<1x256xf32> to vector<8x256xf32>
    %75 = arith.mulf %73, %74 : vector<8x256xf32>
    %76 = arith.addf %70, %75 : vector<8x256xf32>
    %c0_37 = arith.constant 0 : index
    %c143 = arith.constant 143 : index
    %77 = vector.load %arg5[%c0_37, %c143] : memref<5x512xf32, #tpu.memory_space<vmem>>, vector<1x256xf32>
    %c0_38 = arith.constant 0 : index
    %c6 = arith.constant 6 : index
    %78 = vector.load %arg2[%c0_38, %c6] : memref<8x45xf32, #tpu.memory_space<vmem>>, vector<8x1xf32>
    %79 = vector.broadcast %78 : vector<8x1xf32> to vector<8x256xf32>
    %80 = vector.broadcast %77 : vector<1x256xf32> to vector<8x256xf32>
    %81 = arith.mulf %79, %80 : vector<8x256xf32>
    %82 = arith.addf %76, %81 : vector<8x256xf32>
    %c1_39 = arith.constant 1 : index
    %c143_40 = arith.constant 143 : index
    %83 = vector.load %arg5[%c1_39, %c143_40] : memref<5x512xf32, #tpu.memory_space<vmem>>, vector<1x256xf32>
    %c0_41 = arith.constant 0 : index
    %c15 = arith.constant 15 : index
    %84 = vector.load %arg2[%c0_41, %c15] : memref<8x45xf32, #tpu.memory_space<vmem>>, vector<8x1xf32>
    %85 = vector.broadcast %84 : vector<8x1xf32> to vector<8x256xf32>
    %86 = vector.broadcast %83 : vector<1x256xf32> to vector<8x256xf32>
    %87 = arith.mulf %85, %86 : vector<8x256xf32>
    %88 = arith.addf %82, %87 : vector<8x256xf32>
    %c2_42 = arith.constant 2 : index
    %c143_43 = arith.constant 143 : index
    %89 = vector.load %arg5[%c2_42, %c143_43] : memref<5x512xf32, #tpu.memory_space<vmem>>, vector<1x256xf32>
    %c0_44 = arith.constant 0 : index
    %c24 = arith.constant 24 : index
    %90 = vector.load %arg2[%c0_44, %c24] : memref<8x45xf32, #tpu.memory_space<vmem>>, vector<8x1xf32>
    %91 = vector.broadcast %90 : vector<8x1xf32> to vector<8x256xf32>
    %92 = vector.broadcast %89 : vector<1x256xf32> to vector<8x256xf32>
    %93 = arith.mulf %91, %92 : vector<8x256xf32>
    %94 = arith.addf %88, %93 : vector<8x256xf32>
    %c3_45 = arith.constant 3 : index
    %c143_46 = arith.constant 143 : index
    %95 = vector.load %arg5[%c3_45, %c143_46] : memref<5x512xf32, #tpu.memory_space<vmem>>, vector<1x256xf32>
    %c0_47 = arith.constant 0 : index
    %c33 = arith.constant 33 : index
    %96 = vector.load %arg2[%c0_47, %c33] : memref<8x45xf32, #tpu.memory_space<vmem>>, vector<8x1xf32>
    %97 = vector.broadcast %96 : vector<8x1xf32> to vector<8x256xf32>
    %98 = vector.broadcast %95 : vector<1x256xf32> to vector<8x256xf32>
    %99 = arith.mulf %97, %98 : vector<8x256xf32>
    %100 = arith.addf %94, %99 : vector<8x256xf32>
    %c4_48 = arith.constant 4 : index
    %c143_49 = arith.constant 143 : index
    %101 = vector.load %arg5[%c4_48, %c143_49] : memref<5x512xf32, #tpu.memory_space<vmem>>, vector<1x256xf32>
    %c0_50 = arith.constant 0 : index
    %c42 = arith.constant 42 : index
    %102 = vector.load %arg2[%c0_50, %c42] : memref<8x45xf32, #tpu.memory_space<vmem>>, vector<8x1xf32>
    %103 = vector.broadcast %102 : vector<8x1xf32> to vector<8x256xf32>
    %104 = vector.broadcast %101 : vector<1x256xf32> to vector<8x256xf32>
    %105 = arith.mulf %103, %104 : vector<8x256xf32>
    %106 = arith.addf %100, %105 : vector<8x256xf32>
    %c1_i32 = arith.constant 1 : i32
    %107 = vector.broadcast %c1_i32 : i32 to vector<1x256xi32>
    %108 = arith.cmpi sge, %4, %107 : vector<1x256xi32>
    %c17_i32 = arith.constant 17 : i32
    %109 = vector.broadcast %c17_i32 : i32 to vector<1x256xi32>
    %110 = arith.cmpi slt, %4, %109 : vector<1x256xi32>
    %111 = arith.andi %108, %110 : vector<1x256xi1>
    %cst_51 = arith.constant 0.000000e+00 : f32
    %112 = vector.shape_cast %111 : vector<1x256xi1> to vector<1x256xi1>
    %113 = vector.broadcast %112 : vector<1x256xi1> to vector<8x256xi1>
    %114 = vector.broadcast %cst_51 : f32 to vector<8x256xf32>
    %115 = arith.select %113, %106, %114 : vector<8x256xi1>, vector<8x256xf32>
    %116 = arith.addf %15, %115 : vector<8x256xf32>
    %cst_52 = arith.constant 0.000000e+00 : f32
    %117 = vector.broadcast %cst_52 : f32 to vector<8x256xf32>
    %c0_53 = arith.constant 0 : index
    %c112 = arith.constant 112 : index
    %118 = vector.load %arg5[%c0_53, %c112] : memref<5x512xf32, #tpu.memory_space<vmem>>, vector<1x256xf32>
    %c0_54 = arith.constant 0 : index
    %c1_55 = arith.constant 1 : index
    %119 = vector.load %arg2[%c0_54, %c1_55] : memref<8x45xf32, #tpu.memory_space<vmem>>, vector<8x1xf32>
    %120 = vector.broadcast %119 : vector<8x1xf32> to vector<8x256xf32>
    %121 = vector.broadcast %118 : vector<1x256xf32> to vector<8x256xf32>
    %122 = arith.mulf %120, %121 : vector<8x256xf32>
    %123 = arith.addf %117, %122 : vector<8x256xf32>
    %c1_56 = arith.constant 1 : index
    %c112_57 = arith.constant 112 : index
    %124 = vector.load %arg5[%c1_56, %c112_57] : memref<5x512xf32, #tpu.memory_space<vmem>>, vector<1x256xf32>
    %c0_58 = arith.constant 0 : index
    %c10 = arith.constant 10 : index
    %125 = vector.load %arg2[%c0_58, %c10] : memref<8x45xf32, #tpu.memory_space<vmem>>, vector<8x1xf32>
    %126 = vector.broadcast %125 : vector<8x1xf32> to vector<8x256xf32>
    %127 = vector.broadcast %124 : vector<1x256xf32> to vector<8x256xf32>
    %128 = arith.mulf %126, %127 : vector<8x256xf32>
    %129 = arith.addf %123, %128 : vector<8x256xf32>
    %c2_59 = arith.constant 2 : index
    %c112_60 = arith.constant 112 : index
    %130 = vector.load %arg5[%c2_59, %c112_60] : memref<5x512xf32, #tpu.memory_space<vmem>>, vector<1x256xf32>
    %c0_61 = arith.constant 0 : index
    %c19 = arith.constant 19 : index
    %131 = vector.load %arg2[%c0_61, %c19] : memref<8x45xf32, #tpu.memory_space<vmem>>, vector<8x1xf32>
    %132 = vector.broadcast %131 : vector<8x1xf32> to vector<8x256xf32>
    %133 = vector.broadcast %130 : vector<1x256xf32> to vector<8x256xf32>
    %134 = arith.mulf %132, %133 : vector<8x256xf32>
    %135 = arith.addf %129, %134 : vector<8x256xf32>
    %c3_62 = arith.constant 3 : index
    %c112_63 = arith.constant 112 : index
    %136 = vector.load %arg5[%c3_62, %c112_63] : memref<5x512xf32, #tpu.memory_space<vmem>>, vector<1x256xf32>
    %c0_64 = arith.constant 0 : index
    %c28 = arith.constant 28 : index
    %137 = vector.load %arg2[%c0_64, %c28] : memref<8x45xf32, #tpu.memory_space<vmem>>, vector<8x1xf32>
    %138 = vector.broadcast %137 : vector<8x1xf32> to vector<8x256xf32>
    %139 = vector.broadcast %136 : vector<1x256xf32> to vector<8x256xf32>
    %140 = arith.mulf %138, %139 : vector<8x256xf32>
    %141 = arith.addf %135, %140 : vector<8x256xf32>
    %c4_65 = arith.constant 4 : index
    %c112_66 = arith.constant 112 : index
    %142 = vector.load %arg5[%c4_65, %c112_66] : memref<5x512xf32, #tpu.memory_space<vmem>>, vector<1x256xf32>
    %c0_67 = arith.constant 0 : index
    %c37 = arith.constant 37 : index
    %143 = vector.load %arg2[%c0_67, %c37] : memref<8x45xf32, #tpu.memory_space<vmem>>, vector<8x1xf32>
    %144 = vector.broadcast %143 : vector<8x1xf32> to vector<8x256xf32>
    %145 = vector.broadcast %142 : vector<1x256xf32> to vector<8x256xf32>
    %146 = arith.mulf %144, %145 : vector<8x256xf32>
    %147 = arith.addf %141, %146 : vector<8x256xf32>
    %c0_68 = arith.constant 0 : index
    %c128_69 = arith.constant 128 : index
    %148 = vector.load %arg5[%c0_68, %c128_69] : memref<5x512xf32, #tpu.memory_space<vmem>>, vector<1x256xf32>
    %c0_70 = arith.constant 0 : index
    %c4_71 = arith.constant 4 : index
    %149 = vector.load %arg2[%c0_70, %c4_71] : memref<8x45xf32, #tpu.memory_space<vmem>>, vector<8x1xf32>
    %150 = vector.broadcast %149 : vector<8x1xf32> to vector<8x256xf32>
    %151 = vector.broadcast %148 : vector<1x256xf32> to vector<8x256xf32>
    %152 = arith.mulf %150, %151 : vector<8x256xf32>
    %153 = arith.addf %147, %152 : vector<8x256xf32>
    %c1_72 = arith.constant 1 : index
    %c128_73 = arith.constant 128 : index
    %154 = vector.load %arg5[%c1_72, %c128_73] : memref<5x512xf32, #tpu.memory_space<vmem>>, vector<1x256xf32>
    %c0_74 = arith.constant 0 : index
    %c13 = arith.constant 13 : index
    %155 = vector.load %arg2[%c0_74, %c13] : memref<8x45xf32, #tpu.memory_space<vmem>>, vector<8x1xf32>
    %156 = vector.broadcast %155 : vector<8x1xf32> to vector<8x256xf32>
    %157 = vector.broadcast %154 : vector<1x256xf32> to vector<8x256xf32>
    %158 = arith.mulf %156, %157 : vector<8x256xf32>
    %159 = arith.addf %153, %158 : vector<8x256xf32>
    %c2_75 = arith.constant 2 : index
    %c128_76 = arith.constant 128 : index
    %160 = vector.load %arg5[%c2_75, %c128_76] : memref<5x512xf32, #tpu.memory_space<vmem>>, vector<1x256xf32>
    %c0_77 = arith.constant 0 : index
    %c22 = arith.constant 22 : index
    %161 = vector.load %arg2[%c0_77, %c22] : memref<8x45xf32, #tpu.memory_space<vmem>>, vector<8x1xf32>
    %162 = vector.broadcast %161 : vector<8x1xf32> to vector<8x256xf32>
    %163 = vector.broadcast %160 : vector<1x256xf32> to vector<8x256xf32>
    %164 = arith.mulf %162, %163 : vector<8x256xf32>
    %165 = arith.addf %159, %164 : vector<8x256xf32>
    %c3_78 = arith.constant 3 : index
    %c128_79 = arith.constant 128 : index
    %166 = vector.load %arg5[%c3_78, %c128_79] : memref<5x512xf32, #tpu.memory_space<vmem>>, vector<1x256xf32>
    %c0_80 = arith.constant 0 : index
    %c31 = arith.constant 31 : index
    %167 = vector.load %arg2[%c0_80, %c31] : memref<8x45xf32, #tpu.memory_space<vmem>>, vector<8x1xf32>
    %168 = vector.broadcast %167 : vector<8x1xf32> to vector<8x256xf32>
    %169 = vector.broadcast %166 : vector<1x256xf32> to vector<8x256xf32>
    %170 = arith.mulf %168, %169 : vector<8x256xf32>
    %171 = arith.addf %165, %170 : vector<8x256xf32>
    %c4_81 = arith.constant 4 : index
    %c128_82 = arith.constant 128 : index
    %172 = vector.load %arg5[%c4_81, %c128_82] : memref<5x512xf32, #tpu.memory_space<vmem>>, vector<1x256xf32>
    %c0_83 = arith.constant 0 : index
    %c40 = arith.constant 40 : index
    %173 = vector.load %arg2[%c0_83, %c40] : memref<8x45xf32, #tpu.memory_space<vmem>>, vector<8x1xf32>
    %174 = vector.broadcast %173 : vector<8x1xf32> to vector<8x256xf32>
    %175 = vector.broadcast %172 : vector<1x256xf32> to vector<8x256xf32>
    %176 = arith.mulf %174, %175 : vector<8x256xf32>
    %177 = arith.addf %171, %176 : vector<8x256xf32>
    %c0_84 = arith.constant 0 : index
    %c144 = arith.constant 144 : index
    %178 = vector.load %arg5[%c0_84, %c144] : memref<5x512xf32, #tpu.memory_space<vmem>>, vector<1x256xf32>
    %c0_85 = arith.constant 0 : index
    %c7 = arith.constant 7 : index
    %179 = vector.load %arg2[%c0_85, %c7] : memref<8x45xf32, #tpu.memory_space<vmem>>, vector<8x1xf32>
    %180 = vector.broadcast %179 : vector<8x1xf32> to vector<8x256xf32>
    %181 = vector.broadcast %178 : vector<1x256xf32> to vector<8x256xf32>
    %182 = arith.mulf %180, %181 : vector<8x256xf32>
    %183 = arith.addf %177, %182 : vector<8x256xf32>
    %c1_86 = arith.constant 1 : index
    %c144_87 = arith.constant 144 : index
    %184 = vector.load %arg5[%c1_86, %c144_87] : memref<5x512xf32, #tpu.memory_space<vmem>>, vector<1x256xf32>
    %c0_88 = arith.constant 0 : index
    %c16 = arith.constant 16 : index
    %185 = vector.load %arg2[%c0_88, %c16] : memref<8x45xf32, #tpu.memory_space<vmem>>, vector<8x1xf32>
    %186 = vector.broadcast %185 : vector<8x1xf32> to vector<8x256xf32>
    %187 = vector.broadcast %184 : vector<1x256xf32> to vector<8x256xf32>
    %188 = arith.mulf %186, %187 : vector<8x256xf32>
    %189 = arith.addf %183, %188 : vector<8x256xf32>
    %c2_89 = arith.constant 2 : index
    %c144_90 = arith.constant 144 : index
    %190 = vector.load %arg5[%c2_89, %c144_90] : memref<5x512xf32, #tpu.memory_space<vmem>>, vector<1x256xf32>
    %c0_91 = arith.constant 0 : index
    %c25 = arith.constant 25 : index
    %191 = vector.load %arg2[%c0_91, %c25] : memref<8x45xf32, #tpu.memory_space<vmem>>, vector<8x1xf32>
    %192 = vector.broadcast %191 : vector<8x1xf32> to vector<8x256xf32>
    %193 = vector.broadcast %190 : vector<1x256xf32> to vector<8x256xf32>
    %194 = arith.mulf %192, %193 : vector<8x256xf32>
    %195 = arith.addf %189, %194 : vector<8x256xf32>
    %c3_92 = arith.constant 3 : index
    %c144_93 = arith.constant 144 : index
    %196 = vector.load %arg5[%c3_92, %c144_93] : memref<5x512xf32, #tpu.memory_space<vmem>>, vector<1x256xf32>
    %c0_94 = arith.constant 0 : index
    %c34 = arith.constant 34 : index
    %197 = vector.load %arg2[%c0_94, %c34] : memref<8x45xf32, #tpu.memory_space<vmem>>, vector<8x1xf32>
    %198 = vector.broadcast %197 : vector<8x1xf32> to vector<8x256xf32>
    %199 = vector.broadcast %196 : vector<1x256xf32> to vector<8x256xf32>
    %200 = arith.mulf %198, %199 : vector<8x256xf32>
    %201 = arith.addf %195, %200 : vector<8x256xf32>
    %c4_95 = arith.constant 4 : index
    %c144_96 = arith.constant 144 : index
    %202 = vector.load %arg5[%c4_95, %c144_96] : memref<5x512xf32, #tpu.memory_space<vmem>>, vector<1x256xf32>
    %c0_97 = arith.constant 0 : index
    %c43 = arith.constant 43 : index
    %203 = vector.load %arg2[%c0_97, %c43] : memref<8x45xf32, #tpu.memory_space<vmem>>, vector<8x1xf32>
    %204 = vector.broadcast %203 : vector<8x1xf32> to vector<8x256xf32>
    %205 = vector.broadcast %202 : vector<1x256xf32> to vector<8x256xf32>
    %206 = arith.mulf %204, %205 : vector<8x256xf32>
    %207 = arith.addf %201, %206 : vector<8x256xf32>
    %208 = arith.addf %116, %207 : vector<8x256xf32>
    %cst_98 = arith.constant 0.000000e+00 : f32
    %209 = vector.broadcast %cst_98 : f32 to vector<8x256xf32>
    %c0_99 = arith.constant 0 : index
    %c113 = arith.constant 113 : index
    %210 = vector.load %arg5[%c0_99, %c113] : memref<5x512xf32, #tpu.memory_space<vmem>>, vector<1x256xf32>
    %c0_100 = arith.constant 0 : index
    %c2_101 = arith.constant 2 : index
    %211 = vector.load %arg2[%c0_100, %c2_101] : memref<8x45xf32, #tpu.memory_space<vmem>>, vector<8x1xf32>
    %212 = vector.broadcast %211 : vector<8x1xf32> to vector<8x256xf32>
    %213 = vector.broadcast %210 : vector<1x256xf32> to vector<8x256xf32>
    %214 = arith.mulf %212, %213 : vector<8x256xf32>
    %215 = arith.addf %209, %214 : vector<8x256xf32>
    %c1_102 = arith.constant 1 : index
    %c113_103 = arith.constant 113 : index
    %216 = vector.load %arg5[%c1_102, %c113_103] : memref<5x512xf32, #tpu.memory_space<vmem>>, vector<1x256xf32>
    %c0_104 = arith.constant 0 : index
    %c11 = arith.constant 11 : index
    %217 = vector.load %arg2[%c0_104, %c11] : memref<8x45xf32, #tpu.memory_space<vmem>>, vector<8x1xf32>
    %218 = vector.broadcast %217 : vector<8x1xf32> to vector<8x256xf32>
    %219 = vector.broadcast %216 : vector<1x256xf32> to vector<8x256xf32>
    %220 = arith.mulf %218, %219 : vector<8x256xf32>
    %221 = arith.addf %215, %220 : vector<8x256xf32>
    %c2_105 = arith.constant 2 : index
    %c113_106 = arith.constant 113 : index
    %222 = vector.load %arg5[%c2_105, %c113_106] : memref<5x512xf32, #tpu.memory_space<vmem>>, vector<1x256xf32>
    %c0_107 = arith.constant 0 : index
    %c20 = arith.constant 20 : index
    %223 = vector.load %arg2[%c0_107, %c20] : memref<8x45xf32, #tpu.memory_space<vmem>>, vector<8x1xf32>
    %224 = vector.broadcast %223 : vector<8x1xf32> to vector<8x256xf32>
    %225 = vector.broadcast %222 : vector<1x256xf32> to vector<8x256xf32>
    %226 = arith.mulf %224, %225 : vector<8x256xf32>
    %227 = arith.addf %221, %226 : vector<8x256xf32>
    %c3_108 = arith.constant 3 : index
    %c113_109 = arith.constant 113 : index
    %228 = vector.load %arg5[%c3_108, %c113_109] : memref<5x512xf32, #tpu.memory_space<vmem>>, vector<1x256xf32>
    %c0_110 = arith.constant 0 : index
    %c29 = arith.constant 29 : index
    %229 = vector.load %arg2[%c0_110, %c29] : memref<8x45xf32, #tpu.memory_space<vmem>>, vector<8x1xf32>
    %230 = vector.broadcast %229 : vector<8x1xf32> to vector<8x256xf32>
    %231 = vector.broadcast %228 : vector<1x256xf32> to vector<8x256xf32>
    %232 = arith.mulf %230, %231 : vector<8x256xf32>
    %233 = arith.addf %227, %232 : vector<8x256xf32>
    %c4_111 = arith.constant 4 : index
    %c113_112 = arith.constant 113 : index
    %234 = vector.load %arg5[%c4_111, %c113_112] : memref<5x512xf32, #tpu.memory_space<vmem>>, vector<1x256xf32>
    %c0_113 = arith.constant 0 : index
    %c38 = arith.constant 38 : index
    %235 = vector.load %arg2[%c0_113, %c38] : memref<8x45xf32, #tpu.memory_space<vmem>>, vector<8x1xf32>
    %236 = vector.broadcast %235 : vector<8x1xf32> to vector<8x256xf32>
    %237 = vector.broadcast %234 : vector<1x256xf32> to vector<8x256xf32>
    %238 = arith.mulf %236, %237 : vector<8x256xf32>
    %239 = arith.addf %233, %238 : vector<8x256xf32>
    %c0_114 = arith.constant 0 : index
    %c129 = arith.constant 129 : index
    %240 = vector.load %arg5[%c0_114, %c129] : memref<5x512xf32, #tpu.memory_space<vmem>>, vector<1x256xf32>
    %c0_115 = arith.constant 0 : index
    %c5 = arith.constant 5 : index
    %241 = vector.load %arg2[%c0_115, %c5] : memref<8x45xf32, #tpu.memory_space<vmem>>, vector<8x1xf32>
    %242 = vector.broadcast %241 : vector<8x1xf32> to vector<8x256xf32>
    %243 = vector.broadcast %240 : vector<1x256xf32> to vector<8x256xf32>
    %244 = arith.mulf %242, %243 : vector<8x256xf32>
    %245 = arith.addf %239, %244 : vector<8x256xf32>
    %c1_116 = arith.constant 1 : index
    %c129_117 = arith.constant 129 : index
    %246 = vector.load %arg5[%c1_116, %c129_117] : memref<5x512xf32, #tpu.memory_space<vmem>>, vector<1x256xf32>
    %c0_118 = arith.constant 0 : index
    %c14 = arith.constant 14 : index
    %247 = vector.load %arg2[%c0_118, %c14] : memref<8x45xf32, #tpu.memory_space<vmem>>, vector<8x1xf32>
    %248 = vector.broadcast %247 : vector<8x1xf32> to vector<8x256xf32>
    %249 = vector.broadcast %246 : vector<1x256xf32> to vector<8x256xf32>
    %250 = arith.mulf %248, %249 : vector<8x256xf32>
    %251 = arith.addf %245, %250 : vector<8x256xf32>
    %c2_119 = arith.constant 2 : index
    %c129_120 = arith.constant 129 : index
    %252 = vector.load %arg5[%c2_119, %c129_120] : memref<5x512xf32, #tpu.memory_space<vmem>>, vector<1x256xf32>
    %c0_121 = arith.constant 0 : index
    %c23 = arith.constant 23 : index
    %253 = vector.load %arg2[%c0_121, %c23] : memref<8x45xf32, #tpu.memory_space<vmem>>, vector<8x1xf32>
    %254 = vector.broadcast %253 : vector<8x1xf32> to vector<8x256xf32>
    %255 = vector.broadcast %252 : vector<1x256xf32> to vector<8x256xf32>
    %256 = arith.mulf %254, %255 : vector<8x256xf32>
    %257 = arith.addf %251, %256 : vector<8x256xf32>
    %c3_122 = arith.constant 3 : index
    %c129_123 = arith.constant 129 : index
    %258 = vector.load %arg5[%c3_122, %c129_123] : memref<5x512xf32, #tpu.memory_space<vmem>>, vector<1x256xf32>
    %c0_124 = arith.constant 0 : index
    %c32 = arith.constant 32 : index
    %259 = vector.load %arg2[%c0_124, %c32] : memref<8x45xf32, #tpu.memory_space<vmem>>, vector<8x1xf32>
    %260 = vector.broadcast %259 : vector<8x1xf32> to vector<8x256xf32>
    %261 = vector.broadcast %258 : vector<1x256xf32> to vector<8x256xf32>
    %262 = arith.mulf %260, %261 : vector<8x256xf32>
    %263 = arith.addf %257, %262 : vector<8x256xf32>
    %c4_125 = arith.constant 4 : index
    %c129_126 = arith.constant 129 : index
    %264 = vector.load %arg5[%c4_125, %c129_126] : memref<5x512xf32, #tpu.memory_space<vmem>>, vector<1x256xf32>
    %c0_127 = arith.constant 0 : index
    %c41 = arith.constant 41 : index
    %265 = vector.load %arg2[%c0_127, %c41] : memref<8x45xf32, #tpu.memory_space<vmem>>, vector<8x1xf32>
    %266 = vector.broadcast %265 : vector<8x1xf32> to vector<8x256xf32>
    %267 = vector.broadcast %264 : vector<1x256xf32> to vector<8x256xf32>
    %268 = arith.mulf %266, %267 : vector<8x256xf32>
    %269 = arith.addf %263, %268 : vector<8x256xf32>
    %c0_128 = arith.constant 0 : index
    %c145 = arith.constant 145 : index
    %270 = vector.load %arg5[%c0_128, %c145] : memref<5x512xf32, #tpu.memory_space<vmem>>, vector<1x256xf32>
    %c0_129 = arith.constant 0 : index
    %c8 = arith.constant 8 : index
    %271 = vector.load %arg2[%c0_129, %c8] : memref<8x45xf32, #tpu.memory_space<vmem>>, vector<8x1xf32>
    %272 = vector.broadcast %271 : vector<8x1xf32> to vector<8x256xf32>
    %273 = vector.broadcast %270 : vector<1x256xf32> to vector<8x256xf32>
    %274 = arith.mulf %272, %273 : vector<8x256xf32>
    %275 = arith.addf %269, %274 : vector<8x256xf32>
    %c1_130 = arith.constant 1 : index
    %c145_131 = arith.constant 145 : index
    %276 = vector.load %arg5[%c1_130, %c145_131] : memref<5x512xf32, #tpu.memory_space<vmem>>, vector<1x256xf32>
    %c0_132 = arith.constant 0 : index
    %c17 = arith.constant 17 : index
    %277 = vector.load %arg2[%c0_132, %c17] : memref<8x45xf32, #tpu.memory_space<vmem>>, vector<8x1xf32>
    %278 = vector.broadcast %277 : vector<8x1xf32> to vector<8x256xf32>
    %279 = vector.broadcast %276 : vector<1x256xf32> to vector<8x256xf32>
    %280 = arith.mulf %278, %279 : vector<8x256xf32>
    %281 = arith.addf %275, %280 : vector<8x256xf32>
    %c2_133 = arith.constant 2 : index
    %c145_134 = arith.constant 145 : index
    %282 = vector.load %arg5[%c2_133, %c145_134] : memref<5x512xf32, #tpu.memory_space<vmem>>, vector<1x256xf32>
    %c0_135 = arith.constant 0 : index
    %c26 = arith.constant 26 : index
    %283 = vector.load %arg2[%c0_135, %c26] : memref<8x45xf32, #tpu.memory_space<vmem>>, vector<8x1xf32>
    %284 = vector.broadcast %283 : vector<8x1xf32> to vector<8x256xf32>
    %285 = vector.broadcast %282 : vector<1x256xf32> to vector<8x256xf32>
    %286 = arith.mulf %284, %285 : vector<8x256xf32>
    %287 = arith.addf %281, %286 : vector<8x256xf32>
    %c3_136 = arith.constant 3 : index
    %c145_137 = arith.constant 145 : index
    %288 = vector.load %arg5[%c3_136, %c145_137] : memref<5x512xf32, #tpu.memory_space<vmem>>, vector<1x256xf32>
    %c0_138 = arith.constant 0 : index
    %c35 = arith.constant 35 : index
    %289 = vector.load %arg2[%c0_138, %c35] : memref<8x45xf32, #tpu.memory_space<vmem>>, vector<8x1xf32>
    %290 = vector.broadcast %289 : vector<8x1xf32> to vector<8x256xf32>
    %291 = vector.broadcast %288 : vector<1x256xf32> to vector<8x256xf32>
    %292 = arith.mulf %290, %291 : vector<8x256xf32>
    %293 = arith.addf %287, %292 : vector<8x256xf32>
    %c4_139 = arith.constant 4 : index
    %c145_140 = arith.constant 145 : index
    %294 = vector.load %arg5[%c4_139, %c145_140] : memref<5x512xf32, #tpu.memory_space<vmem>>, vector<1x256xf32>
    %c0_141 = arith.constant 0 : index
    %c44 = arith.constant 44 : index
    %295 = vector.load %arg2[%c0_141, %c44] : memref<8x45xf32, #tpu.memory_space<vmem>>, vector<8x1xf32>
    %296 = vector.broadcast %295 : vector<8x1xf32> to vector<8x256xf32>
    %297 = vector.broadcast %294 : vector<1x256xf32> to vector<8x256xf32>
    %298 = arith.mulf %296, %297 : vector<8x256xf32>
    %299 = arith.addf %293, %298 : vector<8x256xf32>
    %c-1_i32 = arith.constant -1 : i32
    %300 = vector.broadcast %c-1_i32 : i32 to vector<1x256xi32>
    %301 = arith.cmpi sge, %4, %300 : vector<1x256xi32>
    %c15_i32_142 = arith.constant 15 : i32
    %302 = vector.broadcast %c15_i32_142 : i32 to vector<1x256xi32>
    %303 = arith.cmpi slt, %4, %302 : vector<1x256xi32>
    %304 = arith.andi %301, %303 : vector<1x256xi1>
    %cst_143 = arith.constant 0.000000e+00 : f32
    %305 = vector.shape_cast %304 : vector<1x256xi1> to vector<1x256xi1>
    %306 = vector.broadcast %305 : vector<1x256xi1> to vector<8x256xi1>
    %307 = vector.broadcast %cst_143 : f32 to vector<8x256xf32>
    %308 = arith.select %306, %299, %307 : vector<8x256xi1>, vector<8x256xf32>
    %309 = arith.addf %208, %308 : vector<8x256xf32>
    %c0_144 = arith.constant 0 : index
    %c0_145 = arith.constant 0 : index
    %310 = vector.load %arg3[%c0_144, %c0_145] : memref<8x1xf32, #tpu.memory_space<vmem>>, vector<8x1xf32>
    %311 = vector.broadcast %310 : vector<8x1xf32> to vector<8x256xf32>
    %312 = arith.addf %309, %311 : vector<8x256xf32>
    %c0_146 = arith.constant 0 : index
    %c0_147 = arith.constant 0 : index
    %c0_148 = arith.constant 0 : index
    %313 = vector.load %arg4[%c0_146, %c0_147, %c0_148] : memref<1x8x256xf32, #tpu.memory_space<vmem>>, vector<1x8x256xf32>
    %314 = vector.shape_cast %313 : vector<1x8x256xf32> to vector<8x256xf32>
    %315 = vector.shape_cast %312 : vector<8x256xf32> to vector<1x8x256xf32>
    tpu.vector_store %arg4[%c0_146, %c0_147, %c0_148], %315 {strides = array<i32>} : memref<1x8x256xf32, #tpu.memory_space<vmem>>, vector<1x8x256xf32>,
    return
  }
  func.func @transform_0(%arg0: i32) -> (i32, i32, i32) {
    %c0_i32 = arith.constant 0 : i32
    %c0_i32_0 = arith.constant 0 : i32
    %c0_i32_1 = arith.constant 0 : i32
    return %arg0, %c0_i32, %c0_i32_0 : i32, i32, i32
  }
  func.func @transform_1(%arg0: i32) -> (i32, i32) {
    %c0_i32 = arith.constant 0 : i32
    %c0_i32_0 = arith.constant 0 : i32
    %c0_i32_1 = arith.constant 0 : i32
    return %c0_i32, %c0_i32_0 : i32, i32
  }
  func.func @transform_2(%arg0: i32) -> (i32, i32) {
    %c0_i32 = arith.constant 0 : i32
    %c0_i32_0 = arith.constant 0 : i32
    %c0_i32_1 = arith.constant 0 : i32
    return %c0_i32, %c0_i32_0 : i32, i32
  }
  func.func @transform_3(%arg0: i32) -> (i32, i32, i32) {
    %c0_i32 = arith.constant 0 : i32
    %c0_i32_0 = arith.constant 0 : i32
    %c0_i32_1 = arith.constant 0 : i32
    return %arg0, %c0_i32, %c0_i32_0 : i32, i32, i32
  }
}

</mosaic_0001>

<bundles_post_ra>
// kernel: tpu_custom_call.1
= control target key start
LH: loop header
LB: loop body
LE: loop exit
PB: predicated region body
PF: predicated region fallthrough
CT: control target
= control target key end

     0   :  { %8 = vsyncpa [#allocation4], 0  ;;  %s2670_s0 = inlined_call_operand.hbm [shape: f32[2,4,256], index: 0, kind: input, shape index: {}]   ;;  %s2671_s1 = inlined_call_operand.vmem [shape: f32[8,45], index: 1, kind: input, shape index: {}]   ;;  %s2672_s2 = inlined_call_operand.vmem [shape: f32[8,1], index: 2, kind: input, shape index: {}]   ;;  %s2673_s3 = inlined_call_operand.hbm [shape: f32[2,8,256], index: 3, kind: output, shape index: {}]  }
   0x1   :  { %10 = vsyncpa [#allocation4 + $0x1], 0 }
   0x2   :  { %11 = vsyncpa [#allocation5], 0 }
   0x3   :  { %13 = vsyncpa [#allocation5 + $0x1], 0  ;;  %s1817_s12 = smov 0   ;;  %s1819_s13 = smov 0  }
   0x4   :  { %s1821_s14 = smov 0   ;;  %s1823_s15 = smov 0  }
   0x5 LB: > { %s1838_s16 = sadd.s32 4294967295, %s1741_s15   ;;  %s1485_s17 = sadd.s32 4294967294, %s1741_s15   ;;  %s1741_s15 = sphi %s1823_s15, %s2786_s15   ;;  %s1737_s14 = sphi %s1821_s14, %s2785_s14   ;;  %s1733_s13 = sphi %s1819_s13, %s2784_s13   ;;  %s1729_s12 = sphi %s1817_s12, %s2783_s12  }
   0x6   : > { %s1842_s18 = sadd.s32 1, %s1741_s15   ;;  %s26_s19 = sadd.s32 1, %s1737_s14 }
   0x7   : > { %s23_s20 = ssub.s32 %s1741_s15, %s1842_s18  ;;  %p33_p0 = scmp.ne.s32.totalorder %s1737_s14, %s1733_s13 }
   0x8   : > { %p24_p1 = scmp.eq.s32.totalorder %s23_s20, 0  ;;  %p34_p2 = scmp.eq.s32.totalorder %s1741_s15, 0 }
   0x9   : > { %p39_p3 = scmp.ne.s32.totalorder %s1733_s13, %s1729_s12  ;;  %p40_p4 = scmp.eq.s32.totalorder %s1838_s16, 0 }
   0xa   : > { %s1854_s21 = scalar_select %p24_p1, %s1737_s14, %s26_s19  }
   0xb   : > { %p1856_p5 = por %p34_p2, %p33_p0  ;;  %p1860_p6 = por %p40_p4, %p39_p3 }
   0xc   : > { %p105_p7 = scmp.eq.s32.totalorder %s1838_s16, 1  ;;  %p111_p8 = scmp.eq.s32.totalorder %s1485_s17, 1 }
   0xd   : > { %p1513_p10 = scmp.lt.s32.totalorder %s1741_s15, 2  ;;  %s137_s26 = sand.u32 1, %s1737_s14  }
   0xe   : > { %p1867_p11 = por %p105_p7, %p33_p0  ;;  %p1871_p12 = por %p111_p8, %p39_p3 }
   0xf   : > { %s1499_s27 = sshll.u32 %s1741_s15, 7  ;;  %s1488_s28 = sshll.u32 %s137_s26, 3 }
  0x10   : > { %s2709_s24 = scalar_select %p1867_p11, 1, 0 }
  0x11   : > { %s2710_s25 = scalar_select %p1871_p12, 1, 0 }
  0x12   : > { %s1880_s4 = scalar_lea.hbm %s2670_s0, %s1499_s27  ;;  %s141_s5 = scalar_lea.vmem [#allocation3], %s1488_s28 }
  0x13   : > { %s149_s6 = sshll.u32 %s141_s5, 4  ;;  %p1884_p13 = pnand %p1513_p10, %p1856_p5  ;;  %s1888_s6 = int_to_ptr.vmem [resolvable:$true] %s149_s6 }
  0x14   : > { %s138_s8 = scalar_lea.sflag [#allocation4], %s137_s26  ;;  %s1645_s9 = scalar_lea.hbm %s1880_s4, 128 }
  0x15   : > { %p1646_p2 = scmp.ne.s32.totalorder %s1880_s4, %s1645_s9  ;;  %p1647_p3 = pneg %p1884_p13 }
  0x16   : > { %s1650_s17 = scalar_lea.hbm %s2670_s0, 256  ;;  %p1651_p5 = scmp.lt.u32.totalorder %s1880_s4, %s2670_s0 }
  0x17   : > { %p1648_p4 = pnand %p1647_p3, %p1646_p2  ;;  %p1652_p8 = scmp.lt.u32.totalorder %s1650_s17, %s1645_s9 }
  0x18   : > { %p1654_p9 = scmp.lt.u32.totalorder %s1645_s9, %s1880_s4 }
  0x19   : > { %p1649_p7 = pneg %p1648_p4  ;;  %p1653_p10 = por %p1652_p8, %p1651_p5 }
  0x1b   : > { %p1655_p0 = por %p1654_p9, %p1653_p10 }
  0x1d   : > { %p1656_p1 = pnand %p1655_p0, %p1649_p7 }
  0x1f   : > { %1659 = shalt.err (!%p1656_p1)
}
  0x20   : > { %s1660_s22 = scalar_lea.vmem %s1888_s6, 128  ;;  %s1743_s26 = smov [#allocation3]  }
  0x21   : > { %p1661_p2 = scmp.ne.s32.totalorder %s1888_s6, %s1660_s22  ;;  %s1665_s27 = sshll.u32 %s1743_s26, 4  ;;  %s1666_s27 = int_to_ptr.vmem [resolvable:$false] %s1665_s27 }
  0x22   : > { %s1667_s28 = scalar_lea.vmem %s1666_s27, 256  ;;  %p1668_p11 = scmp.lt.s32.totalorder %s1888_s6, %s1666_s27 }
  0x23   : > { %p1663_p4 = pnand %p1661_p2, %p1647_p3  ;;  %p1669_p5 = scmp.lt.s32.totalorder %s1667_s28, %s1660_s22 }
  0x25   : > { %p1664_p12 = pneg %p1663_p4  ;;  %p1670_p8 = por %p1669_p5, %p1668_p11 }
  0x27   : > { %p1671_p9 = pnand %p1670_p8, %p1664_p12 }
  0x29   : > { %1674 = shalt.err (!%p1671_p9)
}
  0x2a   : > { %1508 = dma.hbm_to_vmem [thread:$0]  (!%p1884_p13), %s1880_s4, 128, %s1888_s6, %s138_s8  }
  0x2b   : > { %p2712_p0 = scmp.lt.s32.totalorder %s1741_s15, 3  ;;  %p2713_p1 = scmp.ge.s32.totalorder %s1741_s15, 1 }
  0x2d   : > { %p155_p3 = pnand %p2713_p1, %p2712_p0 }
  0x2f   : > { %158 = sbr.rel (%p155_p3) target bundleno = 742 (0x2e6), region = 32 }
  0x36   : > { %s1922_s29 = sand.u32 1, %s1733_s13  }
  0x37   : > { %s1492_s30 = sshll.u32 %s1922_s29, 3  ;;  %s161_s5 = scalar_lea.sflag [#allocation4], %s1922_s29 }
  0x38   : > { %s164_s9 = scalar_lea.vmem [#allocation3], %s1492_s30 }
  0x39   : > { %1720 = dma.done.wait (%p1860_p6), %s161_s5, 128  }
  0x3a   : > { %1722 = vsyncadd (%p1860_p6), %s161_s5, 4294967168  ;;  %v1744_v0 = vmov 18   ;;  %v1745_v1 = vmov 9   ;;  %v187_v2 = vlaneseq  ;;  %v1933_v3 = vld [vmem:[%s2671_s1] sm:$0xff]  ;;  %v1746_v5 = vmov 0.0   ;;  %s1775_s23 = smov 112  }
  0x3b   : > { %1600 = vset.pattern.permute.xlu1 %v1744_v0  ;;  %1599 = vset.pattern.permute.xlu0 %v1745_v1  ;;  %v200_v4 = vld [vmem:[%s164_s9] sm:$0xff]  ;;  %198 = vst [vmem:[#allocation2] sm:$0x1f] %v1746_v5  ;;  %199 = vst [vmem:[#allocation2 + $0x18] sm:$0x1f] %v1746_v5  ;;  %v1748_v12 = vmov 27  }
  0x3c   : > { %291 = vperm.xlu1 %1600, %v1933_v3   ;;  %263 = vperm.xlu0 %1599, %v1933_v3   ;;  %v202_v6 = vcombine.high %v200_v4, %v200_v4  ;;  %204 = vst [vmem:[#allocation2 + $0x8] sm:$0xf] %v200_v4  ;;  %v1937_v7 = vand.u32 127, %v187_v2  ;;  %v1747_v9 = vmov 1966171168   ;;  %v1749_v13 = vmov 3  }
  0x3d   : > { %v210_v10 = vunpack.c.l.s4 %v1747_v9  ;;  %v1946_v16 = vshrl.u32 %v187_v2, 7  ;;  %v1750_v21 = vmov 36   ;;  %v1751_v22 = vmov 1   ;;  %s1776_s7 = smov 96   ;;  %s1793_s8 = smov 17  }
  0x3e   : > { %2714 = vst [vmem:[#allocation9_spill] sm:$0xff] %v1937_v7  ;;  %205 = vst [vmem:[#allocation2 + $0x10] sm:$0xf] %v202_v6  ;;  %v1940_v8 = vadd.s32 128, %v1937_v7  ;;  %v190_v11 = vshra.s32 %v1937_v7, 4  ;;  %v1752_v25 = vmov 12  }
  0x3f   : > { %v211_v18 = vunpack.c.0.s8 %v210_v10  ;;  %v1753_v26 = vmov 28   ;;  %vm226_vm0 = vcmp.lt.s32.totalorder %v187_v2, 256  ;;  %v1754_v29 = vmov 21   ;;  %s1794_s17 = smov 16   ;;  %s1795_s19 = smov 15  }
  0x40   : > { %2715 = vst [vmem:[#allocation10_spill] sm:$0xff] %v1940_v8  ;;  %1601 = vset.pattern.permute.xlu1 %v1748_v12  ;;  %1603 = vset.pattern.permute.xlu0 %v1749_v13  ;;  %v191_v14 = vshra.s32 %v1940_v8, 4  ;;  %v194_v15 = vcvt.s32.f32 %v190_v11  ;;  %v1755_v30 = vmov 13   ;;  %v1756_v31 = vmov 30   ;;  %s1493_s20 = sshll.u32 %s1922_s29, 4  ;;  %s1500_s22 = sshll.u32 %s1838_s16, 8 }
  0x41   : > { %319 = vperm.xlu1 %1601, %v1933_v3   ;;  %373 = vperm.xlu0 %1603, %v1933_v3   ;;  %v214_v23 = vsub.s32 %v211_v18, %v1946_v16  ;;  %v1757_v32 = vmov 5   ;;  %v1758_v33 = vmov 39   ;;  %v1759_v34 = vmov 23   ;;  %s186_s26 = scalar_lea.vmem [#allocation6], %s1493_s20  ;;  %s2626_s5 = scalar_lea.hbm %s2673_s3, %s1500_s22 }
  0x42   : > { %v195_v17 = vcvt.s32.f32 %v191_v14  ;;  %v196_v19 = vmul.f32 0.0625, %v194_v15  ;;  %v1760_v35 = vmov 6   ;;  %v1761_v36 = vmov 15   ;;  %s1415_s27 = sshll.u32 %s186_s26, 4  ;;  %s1401_s9 = scalar_lea.sflag [#allocation5], %s1922_s29  ;;  %s2628_s27 = int_to_ptr.vmem [resolvable:$true] %s1415_s27 }
  0x43   : > { %v1762_v37 = vmov 24   ;;  %v1763_v38 = vmov 33   ;;  %v1764_v39 = vmov 42   ;;  %v1765_v40 = vmov 10   ;;  %s1675_s4 = scalar_lea.vmem %s2628_s27, 256  ;;  %p2780_p11 = scmp.ne.s32.totalorder %s2709_s24, 0 }
  0x44   : > { %v197_v20 = vmul.f32 0.0625, %v195_v17  ;;  %v1766_v41 = vmov 19   ;;  %v1767_v42 = vmov 37   ;;  %v1768_v43 = vmov 4   ;;  %p1676_p6 = scmp.ne.s32.totalorder %s2628_s27, %s1675_s4  ;;  %s1796_s16 = smov [#allocation6]  }
  0x45   : > { %1602 = vset.pattern.permute.xlu1 %v1750_v21  ;;  %1613 = vset.pattern.permute.xlu0 %v1751_v22  ;;  %v1769_v44 = vmov 14   ;;  %v1770_v45 = vmov 22   ;;  %v1771_v46 = vmov 31   ;;  %v1772_v47 = vmov 40   ;;  %s1679_s6 = sshll.u32 %s1796_s16, 4  ;;  %s1680_s6 = int_to_ptr.vmem [resolvable:$false] %s1679_s6 }
  0x46   : > { %347 = vperm.xlu1 %1602, %v1933_v3   ;;  %732 = vperm.xlu0 %1613, %v1933_v3   ;;  %v208_v24 = vcombine.low %v196_v19, %v197_v20  ;;  %v1773_v48 = vmov 32   ;;  %v1774_v49 = vmov 41   ;;  %v231_v50 = vld [vmem:[#allocation2] ss:$8 sm:$0x7]  ;;  %v1973_v51 = vsub.s32 0, %v1946_v16  ;;  %p1677_p12 = pnand %p1676_p6, %p2780_p11  ;;  %p1682_p7 = scmp.lt.s32.totalorder %s2628_s27, %s1680_s6 }
  0x47   : > { %v1980_v54 = vsub.s32 2, %v1946_v16  ;;  %v1983_v55 = vsub.s32 1, %v1946_v16  ;;  %v261_v1 = vld [vmem:[#allocation2 + $0x1] ss:$8 sm:$0x7]  ;;  %vm527_vm1 = vcmask 785408  }
  0x48   : > { %v215_v27 = vrot.slane %v208_v24, %v214_v23  ;;  %v1986_v56 = vrot.slane %v231_v50, %v1973_v51  ;;  %v2005_v2 = vrot.slane %v261_v1, %v1973_v51  ;;  %v289_v6 = vld [vmem:[#allocation2 + $0x2] ss:$8 sm:$0x7]  ;;  %v317_v16 = vld [vmem:[#allocation2 + $0x3] ss:$8 sm:$0x7]  ;;  %p1678_p13 = pneg %p1677_p12 }
  0x49   : > { %v1989_v57 = vrot.slane %v231_v50, %v1980_v54  ;;  %v1992_v58 = vrot.slane %v231_v50, %v1983_v55  ;;  %v2008_v4 = vrot.slane %v261_v1, %v1983_v55  ;;  %v2013_v11 = vrot.slane %v261_v1, %v1980_v54 }
  0x4a   : > { %1604 = vset.pattern.permute.xlu1 %v1752_v25  ;;  %1616 = vset.pattern.permute.xlu0 %v1753_v26  ;;  %v222_v28 = vrot.slane %v215_v27, %v214_v23  ;;  %v2018_v12 = vrot.slane %v289_v6, %v1983_v55  ;;  %v2021_v13 = vrot.slane %v289_v6, %v1973_v51  ;;  %v494_v27 = vld [vmem:[#allocation2 + $0x8] ss:$8 sm:$0x7]  ;;  %vm388_vm2 = vcmask 916480  }
  0x4b   : > { %398 = vperm.xlu1 %1604, %v1933_v3   ;;  %762 = vperm.xlu0 %1616, %v1933_v3   ;;  %v2029_v19 = vrot.slane %v317_v16, %v1983_v55  ;;  %v2032_v21 = vrot.slane %v289_v6, %v1980_v54  ;;  %v2037_v24 = vrot.slane %v317_v16, %v1973_v51  ;;  %vm722_vm3 = vcmask 138240  }
  0x4c   : > { %229 = vst.msk [vmem:[#allocation2 + $0xc] ss:$8 sm:$0x3] %vm226_vm0, %v222_v28  ;;  %vm1065_vm4 = vcmask 130048   ;;  %vm1381_vm6 = vcmask 121856  }
  0x4f   : > { %1605 = vset.pattern.permute.xlu1 %v1754_v29  ;;  %1619 = vset.pattern.permute.xlu0 %v1755_v30 }
  0x50   : > { %422 = vperm.xlu1 %1605, %v1933_v3   ;;  %814 = vperm.xlu0 %1619, %v1933_v3  }
  0x53   : > { %v345_v22 = vld [vmem:[#allocation2 + $0x4] ss:$8 sm:$0x7] }
  0x54   : > { %1606 = vset.pattern.permute.xlu1 %v1756_v31  ;;  %1620 = vset.pattern.permute.xlu0 %v1757_v32  ;;  %v2042_v26 = vrot.slane %v345_v22, %v1983_v55  ;;  %v2048_v31 = vrot.slane %v494_v27, %v1983_v55  ;;  %v2052_v32 = vrot.slane %v317_v16, %v1980_v54 }
  0x55   : > { %446 = vperm.xlu1 %1606, %v1933_v3   ;;  %1123 = vperm.xlu0 %1620, %v1933_v3  }
  0x59   : > { %1607 = vset.pattern.permute.xlu1 %v1758_v33  ;;  %1623 = vset.pattern.permute.xlu0 %v1759_v34  ;;  %v537_v33 = vld [vmem:[#allocation2 + $0x9] ss:$8 sm:$0x7] }
  0x5a   : > { %470 = vperm.xlu1 %1607, %v1933_v3   ;;  %1171 = vperm.xlu0 %1623, %v1933_v3   ;;  %v2093_v6 = vrot.slane %v537_v33, %v1973_v51  ;;  %v2103_v16 = vrot.slane %v537_v33, %v1980_v54 }
  0x5e   : > { %1608 = vset.pattern.permute.xlu1 %v1760_v35  ;;  %1626 = vset.pattern.permute.xlu0 %v1772_v47  ;;  %v2056_v35 = vrot.slane %v345_v22, %v1973_v51  ;;  %v621_v47 = vld [vmem:[#allocation2 + $0xb] ss:$8 sm:$0x7] }
  0x5f   : > { %496 = vperm.xlu1 %1608, %v1933_v3  }
  0x63   : > { %1609 = vset.pattern.permute.xlu1 %v1761_v36 }
  0x64   : > { %539 = vperm.xlu1 %1609, %v1933_v3  }
  0x68   : > { %1610 = vset.pattern.permute.xlu1 %v1762_v37 }
  0x69   : > { %581 = vperm.xlu1 %1610, %v1933_v3  }
  0x6d   : > { %1611 = vset.pattern.permute.xlu1 %v1763_v38  ;;  %v2061_v38 = vrot.slane %v537_v33, %v1983_v55  ;;  %v781_v33 = vld [vmem:[#allocation2 + $0x8] ss:$8 sm:$0x3] }
  0x6e   : > { %623 = vperm.xlu1 %1611, %v1933_v3  }
  0x72   : > { %1612 = vset.pattern.permute.xlu1 %v1764_v39 }
  0x73   : > { %664 = vperm.xlu1 %1612, %v1933_v3  }
  0x77   : > { %1614 = vset.pattern.permute.xlu1 %v1765_v40  ;;  %v579_v40 = vld [vmem:[#allocation2 + $0xa] ss:$8 sm:$0x7] }
  0x78   : > { %742 = vperm.xlu1 %1614, %v1933_v3  }
  0x7c   : > { %1615 = vset.pattern.permute.xlu1 %v1766_v41 }
  0x7d   : > { %752 = vperm.xlu1 %1615, %v1933_v3  }
  0x81   : > { %1617 = vset.pattern.permute.xlu1 %v1767_v42 }
  0x82   : > { %772 = vperm.xlu1 %1617, %v1933_v3  }
  0x86   : > { %1618 = vset.pattern.permute.xlu1 %v1768_v43  ;;  %v2068_v43 = vrot.slane %v345_v22, %v1980_v54 }
  0x87   : > { %783 = vperm.xlu1 %1618, %v1933_v3  }
  0x8b   : > { %1621 = vset.pattern.permute.xlu1 %v1769_v44  ;;  %v2072_v44 = vrot.slane %v494_v27, %v1973_v51 }
  0x8c   : > { %1147 = vperm.xlu1 %1621, %v1933_v3  }
  0x90   : > { %1622 = vset.pattern.permute.xlu1 %v1770_v45  ;;  %v2075_v45 = vrot.slane %v579_v40, %v1983_v55 }
  0x91   : > { %845 = vperm.xlu1 %1622, %v1933_v3  }
  0x95   : > { %1624 = vset.pattern.permute.xlu1 %v1771_v46 }
  0x96   : > { %876 = vperm.xlu1 %1624, %v1933_v3  }
  0x9a   : > { %1625 = vset.pattern.permute.xlu1 %v1773_v48 }
  0x9b   : > { %1195 = vperm.xlu1 %1625, %v1933_v3  }
  0x9f   : > { %1627 = vset.pattern.permute.xlu1 %v1774_v49 }
  0xbb   : > { %v1975_v52 = vpop.permute.xlu1 %291  ;;  %v1977_v53 = vpop.permute.xlu0 %263 }
  0xc0   : > { %v1994_v59 = vpop.permute.xlu1 %319  ;;  %v374_v60 = vpop.permute.xlu0 %373 }
  0xc1   : > { %v376_v61 = vmul.f32 %v374_v60, %v1986_v56  ;;  %v378_v62 = vmul.f32 %v374_v60, %v1989_v57  ;;  %v377_v63 = vmul.f32 %v374_v60, %v1992_v58  ;;  %v2083_v60 = vrot.slane %v621_v47, %v1983_v55 }
  0xc3   : > { %382 = vrot.lane.b32.xlu1 %v376_v61, %s1775_s23  ;;  %386 = vrot.lane.b32.xlu0 %v378_v62, %s1775_s23  ;;  %2716 = vst [vmem:[#allocation11_spill] sm:$0xff] %v2083_v60  ;;  %v2087_v61 = vrot.slane %v494_v27, %v1980_v54  ;;  %v662_v62 = vld [vmem:[#allocation2 + $0xc] ss:$8 sm:$0x7] }
  0xc5   : > { %v2001_v0 = vpop.permute.xlu1 %347  ;;  %v2115_v22 = vpop.permute.xlu0 %732 }
  0xc7   : > { %384 = vrot.lane.b32.xlu1 %v377_v63, %s1775_s23 }
  0xca   : > { %v399_v5 = vpop.permute.xlu1 %398 }
  0xcb   : > { %v401_v9 = vmul.f32 %v399_v5, %v2005_v2  ;;  %v402_v10 = vmul.f32 %v399_v5, %v2008_v4  ;;  %v403_v14 = vmul.f32 %v399_v5, %v2013_v11 }
  0xcd   : > { %407 = vrot.lane.b32.xlu0 %v401_v9, %s1775_s23  ;;  %409 = vrot.lane.b32.xlu1 %v402_v10, %s1775_s23  ;;  %v2096_v9 = vrot.slane %v662_v62, %v1983_v55 }
  0xcf   : > { %v423_v15 = vpop.permute.xlu1 %422  ;;  %2717 = vst [vmem:[#allocation12_spill] sm:$0xff] %v2096_v9 }
  0xd0   : > { %v426_v17 = vmul.f32 %v423_v15, %v2018_v12  ;;  %v425_v18 = vmul.f32 %v423_v15, %v2021_v13  ;;  %v427_v25 = vmul.f32 %v423_v15, %v2032_v21 }
  0xd1   : > { %411 = vrot.lane.b32.xlu0 %v403_v14, %s1775_s23 }
  0xd2   : > { %433 = vrot.lane.b32.xlu1 %v426_v17, %s1775_s23 }
  0xd4   : > { %v447_v20 = vpop.permute.xlu1 %446 }
  0xd5   : > { %431 = vrot.lane.b32.xlu0 %v425_v18, %s1775_s23  ;;  %v450_v23 = vmul.f32 %v447_v20, %v2029_v19  ;;  %v449_v28 = vmul.f32 %v447_v20, %v2037_v24  ;;  %v451_v36 = vmul.f32 %v447_v20, %v2052_v32  ;;  %v2111_v20 = vrot.slane %v579_v40, %v1973_v51 }
  0xd7   : > { %457 = vrot.lane.b32.xlu1 %v450_v23, %s1775_s23 }
  0xd9   : > { %435 = vrot.lane.b32.xlu0 %v427_v25, %s1775_s23  ;;  %v471_v29 = vpop.permute.xlu1 %470  ;;  %v2119_v25 = vrot.slane %v579_v40, %v1980_v54  ;;  %v794_v40 = vrot.slane %v781_v33, %v1983_v55 }
  0xda   : > { %v474_v30 = vmul.f32 %v471_v29, %v2042_v26  ;;  %v473_v39 = vmul.f32 %v471_v29, %v2056_v35  ;;  %v475_v46 = vmul.f32 %v471_v29, %v2068_v43 }
  0xdb   : > { %2718 = vst [vmem:[#allocation13_spill] sm:$0xff] %v2119_v25 }
  0xdc   : > { %481 = vrot.lane.b32.xlu1 %v474_v30, %s1775_s23  ;;  %v2126_v30 = vrot.slane %v621_v47, %v1973_v51 }
  0xdd   : > { %455 = vrot.lane.b32.xlu0 %v449_v28, %s1775_s23  ;;  %v1777_v28 = vmov 7  }
  0xde   : > { %v497_v34 = vpop.permute.xlu1 %496  ;;  %2719 = vst [vmem:[#allocation14_spill] sm:$0xff] %v2126_v30 }
  0xdf   : > { %v516_v37 = vmul.f32 %v2048_v31, %v497_v34  ;;  %v515_v49 = vmul.f32 %v2072_v44, %v497_v34  ;;  %v517_v5 = vmul.f32 %v2087_v61, %v497_v34  ;;  %v2128_v34 = vpop.permute.xlu0 %762 }
  0xe1   : > { %459 = vrot.lane.b32.xlu0 %v451_v36, %s1775_s23  ;;  %523 = vrot.lane.b32.xlu1 %v516_v37, %s1776_s7  ;;  %v812_v37 = vld [vmem:[#allocation2 + $0x9] ss:$8 sm:$0x3] }
  0xe3   : > { %v540_v41 = vpop.permute.xlu1 %539 }
  0xe4   : > { %v559_v42 = vmul.f32 %v2061_v38, %v540_v41  ;;  %v558_v14 = vmul.f32 %v2093_v6, %v540_v41  ;;  %v560_v17 = vmul.f32 %v2103_v16, %v540_v41  ;;  %v2136_v41 = vrot.slane %v621_v47, %v1980_v54 }
  0xe5   : > { %479 = vrot.lane.b32.xlu0 %v473_v39, %s1775_s23 }
  0xe6   : > { %566 = vrot.lane.b32.xlu1 %v559_v42, %s1776_s7  ;;  %2720 = vst [vmem:[#allocation15_spill] sm:$0xff] %v2136_v41  ;;  %v821_v42 = vrot.slane %v812_v37, %v1973_v51 }
  0xe8   : > { %v582_v48 = vpop.permute.xlu1 %581 }
  0xe9   : > { %483 = vrot.lane.b32.xlu0 %v475_v46, %s1775_s23  ;;  %v601_v50 = vmul.f32 %v2075_v45, %v582_v48  ;;  %v600_v23 = vmul.f32 %v2111_v20, %v582_v48  ;;  %v602_v29 = vmul.f32 %v2119_v25, %v582_v48  ;;  %v815_v48 = vpop.permute.xlu0 %814 }
  0xea   : > { %v828_v47 = vmul.f32 %v821_v42, %v815_v48 }
  0xeb   : > { %608 = vrot.lane.b32.xlu1 %v601_v50, %s1776_s7 }
  0xed   : > { %521 = vrot.lane.b32.xlu0 %v515_v49, %s1776_s7  ;;  %v624_v63 = vpop.permute.xlu1 %623 }
  0xee   : > { %v643_v1 = vmul.f32 %v2083_v60, %v624_v63  ;;  %v642_v39 = vmul.f32 %v2126_v30, %v624_v63  ;;  %v644_v50 = vmul.f32 %v2136_v41, %v624_v63 }
  0xf0   : > { %650 = vrot.lane.b32.xlu1 %v643_v1, %s1776_s7  ;;  %v2142_v1 = vrot.slane %v662_v62, %v1973_v51 }
  0xf1   : > { %525 = vrot.lane.b32.xlu0 %v517_v5, %s1776_s7  ;;  %v825_v5 = vrot.slane %v812_v37, %v1983_v55 }
  0xf2   : > { %v665_v10 = vpop.permute.xlu1 %664  ;;  %2721 = vst [vmem:[#allocation16_spill] sm:$0xff] %v2142_v1 }
  0xf3   : > { %v684_v15 = vmul.f32 %v2096_v9, %v665_v10 }
  0xf5   : > { %564 = vrot.lane.b32.xlu0 %v558_v14, %s1776_s7  ;;  %691 = vrot.lane.b32.xlu1 %v684_v15, %s1776_s7  ;;  %v683_v14 = vmul.f32 %v2142_v1, %v665_v10  ;;  %v2149_v15 = vrot.slane %v662_v62, %v1980_v54  ;;  %v1778_v54 = vmov 16   ;;  %v1779_v62 = vmov 8  }
  0xf7   : > { %v2108_v18 = vpop.permute.xlu1 %742  ;;  %2722 = vst [vmem:[#allocation17_spill] sm:$0xff] %v2149_v15  ;;  %v685_v63 = vmul.f32 %v2149_v15, %v665_v10  ;;  %v1780_v10 = vmov 17  }
  0xf9   : > { %568 = vrot.lane.b32.xlu0 %v560_v17, %s1776_s7  ;;  %1219 = vperm.xlu1 %1627, %v1933_v3   ;;  %v790_v17 = vrot.slane %v781_v33, %v1973_v51  ;;  %v1782_v33 = vmov 26  }
  0xfc   : > { %v2121_v27 = vpop.permute.xlu1 %752 }
  0xfd   : > { %606 = vrot.lane.b32.xlu0 %v600_v23, %s1776_s7  ;;  %1628 = vset.pattern.permute.xlu1 %v1777_v28  ;;  %v829_v23 = vmul.f32 %v825_v5, %v815_v48  ;;  %v1786_v48 = vmov 43  }
 0x101   : > { %610 = vrot.lane.b32.xlu0 %v602_v29, %s1776_s7  ;;  %v2131_v36 = vpop.permute.xlu1 %772  ;;  %v1781_v29 = vmov 25  }
 0x105   : > { %648 = vrot.lane.b32.xlu0 %v642_v39, %s1776_s7  ;;  %v1783_v39 = vmov 35  }
 0x106   : > { %v784_v46 = vpop.permute.xlu1 %783 }
 0x107   : > { %v798_v49 = vmul.f32 %v794_v40, %v784_v46  ;;  %v797_v28 = vmul.f32 %v790_v17, %v784_v46  ;;  %v1784_v40 = vmov 34   ;;  %v1785_v46 = vmov 2  }
 0x108   : > { %v1789_v17 = vmov 0  }
 0x109   : > { %652 = vrot.lane.b32.xlu0 %v644_v50, %s1776_s7  ;;  %803 = vrot.lane.b32.xlu1 %v798_v49, %s1775_s23  ;;  %v1124_v49 = vpop.permute.xlu0 %1123  ;;  %v1787_v50 = vmov 29  }
 0x10b   : > { %v1148_v37 = vpop.permute.xlu1 %1147 }
 0x10c   : > { %v1151_v8 = vmul.f32 %v1148_v37, %v2061_v38 }
 0x10d   : > { %689 = vrot.lane.b32.xlu0 %v683_v14, %s1776_s7  ;;  %832 = vrot.lane.b32.xlu1 %v828_v47, %s1775_s23  ;;  %v1788_v47 = vmov 44   ;;  %v1172_v14 = vpop.permute.xlu0 %1171 }
 0x110   : > { %v846_v42 = vpop.permute.xlu1 %845 }
 0x111   : > { %693 = vrot.lane.b32.xlu0 %v685_v63, %s1776_s7  ;;  %834 = vrot.lane.b32.xlu1 %v829_v23, %s1775_s23  ;;  %v1790_v23 = vmov 11   ;;  %v1127_v63 = vmul.f32 %v1124_v49, %v2048_v31 }
 0x115   : > { %801 = vrot.lane.b32.xlu0 %v797_v28, %s1775_s23  ;;  %937 = vperm.xlu1 %1628, %v1933_v3   ;;  %v2169_v5 = vpop.permute.xlu1 %876 }
 0x119   : > { %907 = vperm.xlu0 %1626, %v1933_v3   ;;  %1630 = vset.pattern.permute.xlu1 %v1778_v54 }
 0x11a   : > { %961 = vperm.xlu1 %1630, %v1933_v3   ;;  %v1196_v28 = vpop.permute.xlu1 %1195 }
 0x11d   : > { %1629 = vset.pattern.permute.xlu0 %v1779_v62  ;;  %v1150_v62 = vmul.f32 %v1148_v37, %v2093_v6 }
 0x11e   : > { %1243 = vperm.xlu0 %1629, %v1933_v3   ;;  %1631 = vset.pattern.permute.xlu1 %v1780_v10  ;;  %v843_v10 = vld [vmem:[#allocation2 + $0xa] ss:$8 sm:$0x3] }
 0x11f   : > { %1267 = vperm.xlu1 %1631, %v1933_v3  }
 0x122   : > { %1632 = vset.pattern.permute.xlu0 %v1781_v29  ;;  %v1791_v29 = vmov 20  }
 0x123   : > { %985 = vperm.xlu0 %1632, %v1933_v3   ;;  %1633 = vset.pattern.permute.xlu1 %v1782_v33 }
 0x124   : > { %1291 = vperm.xlu1 %1633, %v1933_v3  }
 0x127   : > { %1635 = vset.pattern.permute.xlu0 %v1783_v39  ;;  %v856_v39 = vrot.slane %v843_v10, %v1983_v55 }
 0x128   : > { %1315 = vperm.xlu0 %1635, %v1933_v3   ;;  %1634 = vset.pattern.permute.xlu1 %v1784_v40 }
 0x129   : > { %1009 = vperm.xlu1 %1634, %v1933_v3  }
 0x12c   : > { %1638 = vset.pattern.permute.xlu0 %v1785_v46  ;;  %v1152_v46 = vmul.f32 %v1148_v37, %v2103_v16 }
 0x12d   : > { %1073 = vperm.xlu0 %1638, %v1933_v3   ;;  %1636 = vset.pattern.permute.xlu1 %v1786_v48  ;;  %v1792_v48 = vmov 38  }
 0x12e   : > { %1033 = vperm.xlu1 %1636, %v1933_v3  }
 0x131   : > { %1641 = vset.pattern.permute.xlu0 %v1787_v50  ;;  %v860_v50 = vmul.f32 %v856_v39, %v846_v42  ;;  %v1175_v39 = vmul.f32 %v1172_v14, %v2075_v45 }
 0x132   : > { %1103 = vperm.xlu0 %1641, %v1933_v3   ;;  %1637 = vset.pattern.permute.xlu1 %v1788_v47 }
 0x133   : > { %1339 = vperm.xlu1 %1637, %v1933_v3  }
 0x135   : > { %v2176_v54 = vpop.permute.xlu0 %386  ;;  %v2181_v33 = vpop.permute.xlu1 %382 }
 0x136   : > { %1642 = vset.pattern.permute.xlu0 %v1789_v17  ;;  %v874_v17 = vld [vmem:[#allocation2 + $0xb] ss:$8 sm:$0x3] }
 0x137   : > { %235 = vperm.xlu0 %1642, %v1933_v3   ;;  %1639 = vset.pattern.permute.xlu1 %v1790_v23 }
 0x138   : > { %1083 = vperm.xlu1 %1639, %v1933_v3  }
 0x139   : > { %v2192_v23 = vpop.permute.xlu1 %384 }
 0x13b   : > { %1134 = vrot.lane.b32.xlu0 %v1127_v63, %s1775_s23  ;;  %v1126_v63 = vmul.f32 %v1124_v49, %v2072_v44 }
 0x13c   : > { %1640 = vset.pattern.permute.xlu1 %v1791_v29 }
 0x13d   : > { %1093 = vperm.xlu1 %1640, %v1933_v3  }
 0x13f   : > { %1156 = vrot.lane.b32.xlu0 %v1150_v62, %s1775_s23  ;;  %v2185_v40 = vpop.permute.xlu0 %407  ;;  %v883_v62 = vrot.slane %v874_v17, %v1973_v51 }
 0x141   : > { %1643 = vset.pattern.permute.xlu1 %v1792_v48  ;;  %v2203_v48 = vpop.permute.xlu1 %409 }
 0x142   : > { %1113 = vperm.xlu1 %1643, %v1933_v3   ;;  %v1128_v3 = vmul.f32 %v1124_v49, %v2087_v61 }
 0x143   : > { %1160 = vrot.lane.b32.xlu0 %v1152_v46, %s1775_s23  ;;  %v2190_v47 = vpop.permute.xlu0 %411  ;;  %v852_v46 = vrot.slane %v843_v10, %v1973_v51  ;;  %v1198_v10 = vmul.f32 %v1196_v28, %v2126_v30  ;;  %v777_v30 = vmul.f32 %v2131_v36, %v2068_v43 }
 0x146   : > { %1132 = vrot.lane.b32.xlu1 %v1126_v63, %s1775_s23  ;;  %v890_v63 = vmul.f32 %v883_v62, %v2169_v5  ;;  %v1174_v62 = vmul.f32 %v1172_v14, %v2111_v20 }
 0x147   : > { %865 = vrot.lane.b32.xlu0 %v860_v50, %s1775_s23  ;;  %v2198_v29 = vpop.permute.xlu0 %431  ;;  %v859_v50 = vmul.f32 %v852_v46, %v846_v42  ;;  %v1200_v42 = vmul.f32 %v1196_v28, %v2136_v41 }
 0x148   : > { %2723 = vst [vmem:[#allocation18_spill] sm:$0xff] %v2198_v29  ;;  %v2211_v29 = vpop.permute.xlu1 %433 }
 0x14a   : > { %1136 = vrot.lane.b32.xlu1 %v1128_v3, %s1775_s23 }
 0x14b   : > { %1182 = vrot.lane.b32.xlu0 %v1175_v39, %s1775_s23  ;;  %v2209_v7 = vpop.permute.xlu0 %435 }
 0x14c   : > { %v2218_v3 = vpop.permute.xlu1 %457 }
 0x14d   : > { %2725 = vst [vmem:[#allocation20_spill] sm:$0xff] %v2218_v3 }
 0x14e   : > { %1158 = vrot.lane.b32.xlu1 %v1151_v8, %s1775_s23  ;;  %v887_v8 = vrot.slane %v874_v17, %v1983_v55  ;;  %v1199_v17 = vmul.f32 %v1196_v28, %v2083_v60  ;;  %v747_v28 = vmul.f32 %v2108_v18, %v2013_v11  ;;  %v736_v60 = vmul.f32 %v2115_v22, %v1992_v58 }
 0x14f   : > { %v2214_v49 = vpop.permute.xlu0 %455  ;;  %894 = vrot.lane.b32.xlu0 %v890_v63, %s1775_s23  ;;  %v1176_v63 = vmul.f32 %v1172_v14, %v2119_v25 }
 0x150   : > { %2724 = vst [vmem:[#allocation19_spill] sm:$0xff] %v2214_v49  ;;  %v2228_v39 = vpop.permute.xlu1 %481 }
 0x151   : > { %2727 = vst [vmem:[#allocation22_spill] sm:$0xff] %v2228_v39 }
 0x152   : > { %863 = vrot.lane.b32.xlu1 %v859_v50, %s1775_s23  ;;  %v891_v50 = vmul.f32 %v887_v8, %v2169_v5 }
 0x153   : > { %v2221_v37 = vpop.permute.xlu0 %459  ;;  %1204 = vrot.lane.b32.xlu0 %v1198_v10, %s1775_s23 }
 0x154   : > { %2726 = vst [vmem:[#allocation21_spill] sm:$0xff] %v2221_v37  ;;  %v2236_v10 = vpop.permute.xlu1 %523  ;;  %v756_v37 = vmul.f32 %v2121_v27, %v2018_v12 }
 0x155   : > { %2729 = vst [vmem:[#allocation24_spill] sm:$0xff] %v2236_v10 }
 0x156   : > { %1180 = vrot.lane.b32.xlu1 %v1174_v62, %s1775_s23 }
 0x157   : > { %v2230_v46 = vpop.permute.xlu0 %479  ;;  %1208 = vrot.lane.b32.xlu0 %v1200_v42, %s1775_s23 }
 0x158   : > { %2728 = vst [vmem:[#allocation23_spill] sm:$0xff] %v2230_v46  ;;  %v2244_v39 = vpop.permute.xlu1 %566  ;;  %v746_v46 = vmul.f32 %v2108_v18, %v2008_v4 }
 0x159   : > { %2732 = vst [vmem:[#allocation27_spill] sm:$0xff] %v2244_v39 }
 0x15a   : > { %1184 = vrot.lane.b32.xlu1 %v1176_v63, %s1775_s23  ;;  %v749_v49 = vadd.f32 %v746_v46, %v736_v60 }
 0x15b   : > { %v2238_v41 = vpop.permute.xlu0 %483 }
 0x15c   : > { %2730 = vst [vmem:[#allocation25_spill] sm:$0xff] %v2238_v41  ;;  %v759_v60 = vadd.f32 %v756_v37, %v749_v49 }
 0x15d   : > { %v2249_v14 = vpop.permute.xlu1 %608 }
 0x15e   : > { %896 = vrot.lane.b32.xlu1 %v891_v50, %s1775_s23  ;;  %2734 = vst [vmem:[#allocation29_spill] sm:$0xff] %v2249_v14  ;;  %v737_v50 = vmul.f32 %v2115_v22, %v1989_v57 }
 0x15f   : > { %v2242_v62 = vpop.permute.xlu0 %521 }
 0x160   : > { %2731 = vst [vmem:[#allocation26_spill] sm:$0xff] %v2242_v62  ;;  %v735_v62 = vmul.f32 %v2115_v22, %v1986_v56 }
 0x162   : > { %1206 = vrot.lane.b32.xlu1 %v1199_v17, %s1775_s23  ;;  %v2255_v63 = vpop.permute.xlu1 %650 }
 0x163   : > { %v2247_v42 = vpop.permute.xlu0 %525  ;;  %2737 = vst [vmem:[#allocation32_spill] sm:$0xff] %v2255_v63 }
 0x164   : > { %2733 = vst [vmem:[#allocation28_spill] sm:$0xff] %v2247_v42 }
 0x167   : > { %v2251_v5 = vpop.permute.xlu0 %564  ;;  %v2263_v39 = vpop.permute.xlu1 %691 }
 0x168   : > { %2735 = vst [vmem:[#allocation30_spill] sm:$0xff] %v2251_v5  ;;  %2739 = vst [vmem:[#allocation34_spill] sm:$0xff] %v2263_v39  ;;  %v750_v5 = vadd.f32 %v747_v28, %v737_v50  ;;  %v755_v28 = vmul.f32 %v2121_v27, %v2021_v13 }
 0x16b   : > { %v2253_v8 = vpop.permute.xlu0 %568 }
 0x16c   : > { %2736 = vst [vmem:[#allocation31_spill] sm:$0xff] %v2253_v8  ;;  %v757_v8 = vmul.f32 %v2121_v27, %v2032_v21 }
 0x16f   : > { %v2257_v10 = vpop.permute.xlu0 %606 }
 0x170   : > { %2738 = vst [vmem:[#allocation33_spill] sm:$0xff] %v2257_v10  ;;  %v745_v10 = vmul.f32 %v2108_v18, %v2005_v2 }
 0x172   : > { %v748_v50 = vadd.f32 %v745_v10, %v735_v62  ;;  %v766_v10 = vmul.f32 %v2128_v34, %v2029_v19 }
 0x173   : > { %v611_v17 = vpop.permute.xlu0 %610 }
 0x174   : > { %v2267_v42 = vsel %vm527_vm1, %v2249_v14, %v611_v17  ;;  %v760_v14 = vadd.f32 %v757_v8, %v750_v5  ;;  %v765_v5 = vmul.f32 %v2128_v34, %v2037_v24  ;;  %v758_v8 = vadd.f32 %v755_v28, %v748_v50 }
 0x175   : > { %2740 = vst [vmem:[#allocation35_spill] sm:$0xff] %v2267_v42  ;;  %v767_v42 = vmul.f32 %v2128_v34, %v2052_v32  ;;  %v769_v25 = vadd.f32 %v766_v10, %v759_v60  ;;  %v905_v60 = vld [vmem:[#allocation2 + $0xc] ss:$8 sm:$0x3] }
 0x177   : > { %v2279_v41 = vpop.permute.xlu0 %648 }
 0x178   : > { %2741 = vst [vmem:[#allocation36_spill] sm:$0xff] %v2279_v41  ;;  %v1220_v17 = vpop.permute.xlu1 %1219  ;;  %v770_v41 = vadd.f32 %v767_v42, %v760_v14  ;;  %v776_v42 = vmul.f32 %v2131_v36, %v2042_v26 }
 0x17a   : > { %v780_v46 = vadd.f32 %v777_v30, %v770_v41  ;;  %v779_v50 = vadd.f32 %v776_v42, %v769_v25  ;;  %v1222_v25 = vmul.f32 %v1220_v17, %v2142_v1 }
 0x17b   : > { %v653_v3 = vpop.permute.xlu0 %652 }
 0x17c   : > { %v2289_v18 = vsel %vm527_vm1, %v2255_v63, %v653_v3  ;;  %v804_v22 = vpop.permute.xlu1 %803  ;;  %v775_v3 = vmul.f32 %v2131_v36, %v2056_v35 }
 0x17d   : > { %2742 = vst [vmem:[#allocation37_spill] sm:$0xff] %v2289_v18  ;;  %v768_v18 = vadd.f32 %v765_v5, %v758_v8  ;;  %v811_v14 = vadd.f32 %v804_v22, %v780_v46 }
 0x17f   : > { %v2297_v62 = vpop.permute.xlu0 %689  ;;  %v778_v30 = vadd.f32 %v775_v3, %v768_v18 }
 0x180   : > { %2743 = vst [vmem:[#allocation38_spill] sm:$0xff] %v2297_v62  ;;  %v833_v27 = vpop.permute.xlu1 %832 }
 0x183   : > { %v694_v63 = vpop.permute.xlu0 %693 }
 0x184   : > { %v2305_v28 = vsel %vm527_vm1, %v2263_v39, %v694_v63  ;;  %v835_v34 = vpop.permute.xlu1 %834  ;;  %v914_v63 = vrot.slane %v905_v60, %v1973_v51  ;;  %v1224_v51 = vmul.f32 %v1220_v17, %v2149_v15 }
 0x185   : > { %2744 = vst [vmem:[#allocation39_spill] sm:$0xff] %v2305_v28  ;;  %v836_v49 = vsel %vm388_vm2, %v833_v27, %v835_v34  ;;  %v2308_v37 = vadd.f32 %v835_v34, %v811_v14  ;;  %v918_v28 = vrot.slane %v905_v60, %v1983_v55 }
 0x187   : > { %v802_v41 = vpop.permute.xlu0 %801 }
 0x188   : > { %v805_v5 = vsel %vm388_vm2, %v802_v41, %v804_v22  ;;  %v809_v8 = vadd.f32 %v802_v41, %v778_v30  ;;  %v1223_v22 = vmul.f32 %v1220_v17, %v2096_v9 }
 0x189   : > { %v810_v36 = vadd.f32 %v805_v5, %v779_v50 }
 0x18a   : > { %v2311_v46 = vadd.f32 %v833_v27, %v809_v8 }
 0x18b   : > { %v2313_v10 = vadd.f32 %v836_v49, %v810_v36 }
 0x194   : > { %v938_v62 = vpop.permute.xlu1 %937 }
 0x195   : > { %v940_v42 = vmul.f32 %v938_v62, %v2072_v44 }
 0x198   : > { %v908_v39 = vpop.permute.xlu0 %907 }
 0x199   : > { %v921_v14 = vmul.f32 %v914_v63, %v908_v39  ;;  %v922_v34 = vmul.f32 %v918_v28, %v908_v39  ;;  %v962_v18 = vpop.permute.xlu1 %961  ;;  %v941_v39 = vmul.f32 %v938_v62, %v2048_v31  ;;  %v942_v28 = vmul.f32 %v938_v62, %v2087_v61 }
 0x19a   : > { %v964_v62 = vmul.f32 %v962_v18, %v2093_v6  ;;  %v965_v60 = vmul.f32 %v962_v18, %v2061_v38  ;;  %v966_v63 = vmul.f32 %v962_v18, %v2103_v16  ;;  %v283_v18 = vmul.f32 %v2008_v4, %v1977_v53 }
 0x19b   : > { %927 = vrot.lane.b32.xlu0 %v922_v34, %s1775_s23  ;;  %925 = vrot.lane.b32.xlu1 %v921_v14, %s1775_s23  ;;  %v312_v14 = vmul.f32 %v2032_v21, %v1975_v52  ;;  %v282_v34 = vmul.f32 %v2005_v2, %v1977_v53 }
 0x19d   : > { %v1244_v27 = vpop.permute.xlu0 %1243 }
 0x19e   : > { %v1268_v3 = vpop.permute.xlu1 %1267  ;;  %v1246_v17 = vmul.f32 %v1244_v27, %v2072_v44  ;;  %v1247_v50 = vmul.f32 %v1244_v27, %v2048_v31  ;;  %v1248_v8 = vmul.f32 %v1244_v27, %v2087_v61  ;;  %v310_v31 = vmul.f32 %v2021_v13, %v1975_v52 }
 0x19f   : > { %1230 = vrot.lane.b32.xlu0 %v1223_v22, %s1775_s23  ;;  %1228 = vrot.lane.b32.xlu1 %v1222_v25, %s1775_s23  ;;  %v311_v44 = vmul.f32 %v2018_v12, %v1975_v52  ;;  %v284_v25 = vmul.f32 %v2013_v11, %v1977_v53  ;;  %v338_v22 = vmul.f32 %v2037_v24, %v1994_v59 }
 0x1a0   : > { %v1270_v52 = vmul.f32 %v1268_v3, %v2093_v6  ;;  %v366_v53 = vmul.f32 %v2056_v35, %v2001_v0  ;;  %v390_v6 = vsel %vm388_vm2, %v2192_v23, %v2176_v54 }
 0x1a2   : > { %v2325_v55 = vpop.permute.xlu0 %985 }
 0x1a3   : > { %1232 = vrot.lane.b32.xlu1 %v1224_v51, %s1775_s23  ;;  %946 = vrot.lane.b32.xlu0 %v940_v42, %s1776_s7  ;;  %v2331_v49 = vpop.permute.xlu1 %1291  ;;  %v339_v42 = vmul.f32 %v2029_v19, %v1994_v59  ;;  %v1271_v51 = vmul.f32 %v1268_v3, %v2061_v38  ;;  %v389_v38 = vsel %vm388_vm2, %v2181_v33, %v2192_v23  ;;  %s1681_s23 = scalar_lea.vmem %s1680_s6, 512 }
 0x1a4   : > { %v1272_v33 = vmul.f32 %v1268_v3, %v2103_v16  ;;  %p1683_p10 = scmp.lt.s32.totalorder %s1681_s23, %s1675_s4 }
 0x1a6   : > { %p1684_p2 = por %p1683_p10, %p1682_p7 }
 0x1a7   : > { %v2333_v30 = vpop.permute.xlu0 %1315  ;;  %948 = vrot.lane.b32.xlu1 %v941_v39, %s1776_s7  ;;  %950 = vrot.lane.b32.xlu0 %v942_v28, %s1776_s7  ;;  %v340_v39 = vmul.f32 %v2052_v32, %v1994_v59  ;;  %v367_v28 = vmul.f32 %v2042_v26, %v2001_v0  ;;  %v2392_v59 = vsel %vm388_vm2, %v2185_v40, %v2203_v48 }
 0x1a8   : > { %v2337_v41 = vpop.permute.xlu1 %1009  ;;  %p1685_p4 = pnand %p1684_p2, %p1678_p13 }
 0x1ab   : > { %1252 = vrot.lane.b32.xlu1 %v1246_v17, %s1776_s7  ;;  %1254 = vrot.lane.b32.xlu0 %v1247_v50, %s1776_s7  ;;  %v368_v17 = vmul.f32 %v2068_v43, %v2001_v0  ;;  %v2397_v50 = vsel %vm388_vm2, %v2203_v48, %v2190_v47  ;;  %v2747_v0 = vld [vmem:[#allocation18_spill] sm:$0xff] }
 0x1ac   : > { %v1074_v5 = vpop.permute.xlu0 %1073 }
 0x1ad   : > { %v2345_v36 = vpop.permute.xlu1 %1033  ;;  %v1077_v23 = vmul.f32 %v1074_v5, %v1992_v58 }
 0x1ae   : > { %2745 = vst [vmem:[#allocation40_spill] sm:$0xff] %v2345_v36 }
 0x1af   : > { %1256 = vrot.lane.b32.xlu1 %v1248_v8, %s1776_s7  ;;  %970 = vrot.lane.b32.xlu0 %v964_v62, %s1776_s7  ;;  %v2402_v62 = vsel %vm388_vm2, %v2747_v0, %v2211_v29  ;;  %v1076_v8 = vmul.f32 %v1074_v5, %v1986_v56  ;;  %v1078_v0 = vmul.f32 %v1074_v5, %v1989_v57 }
 0x1b1   : > { %v2357_v61 = vpop.permute.xlu0 %1103 }
 0x1b2   : > { %v2367_v27 = vpop.permute.xlu1 %1339 }
 0x1b3   : > { %2746 = vst [vmem:[#allocation41_spill] sm:$0xff] %v2367_v27  ;;  %972 = vrot.lane.b32.xlu1 %v965_v60, %s1776_s7  ;;  %974 = vrot.lane.b32.xlu0 %v966_v63, %s1776_s7 }
 0x1b6   : > { %v236_v60 = vpop.permute.xlu0 %235 }
 0x1b7   : > { %v254_v40 = vmul.f32 %v1986_v56, %v236_v60  ;;  %v255_v63 = vmul.f32 %v1992_v58, %v236_v60  ;;  %v256_v27 = vmul.f32 %v1989_v57, %v236_v60  ;;  %1278 = vrot.lane.b32.xlu0 %v1271_v51, %s1776_s7  ;;  %1276 = vrot.lane.b32.xlu1 %v1270_v52, %s1776_s7  ;;  %v1084_v48 = vpop.permute.xlu1 %1083 }
 0x1b8   : > { %v1086_v16 = vmul.f32 %v1084_v48, %v2005_v2  ;;  %v1087_v3 = vmul.f32 %v1084_v48, %v2008_v4  ;;  %v1088_v15 = vmul.f32 %v1084_v48, %v2013_v11  ;;  %v988_v56 = vmul.f32 %v2325_v55, %v2111_v20 }
 0x1b9   : > { %v285_v9 = vadd.f32 %v282_v34, %v254_v40  ;;  %v286_v58 = vadd.f32 %v283_v18, %v255_v63  ;;  %v287_v36 = vadd.f32 %v284_v25, %v256_v27  ;;  %v438_v51 = vsel %vm388_vm2, %v2211_v29, %v2209_v7  ;;  %v2748_v34 = vld [vmem:[#allocation13_spill] sm:$0xff] }
 0x1ba   : > { %v1089_v52 = vadd.f32 %v1086_v16, %v1076_v8  ;;  %v1090_v60 = vadd.f32 %v1087_v3, %v1077_v23  ;;  %v1091_v1 = vadd.f32 %v1088_v15, %v1078_v0  ;;  %v2421_v57 = vpop.permute.xlu0 %1134  ;;  %v989_v11 = vmul.f32 %v2325_v55, %v2075_v45 }
 0x1bb   : > { %v313_v2 = vadd.f32 %v310_v31, %v285_v9  ;;  %v314_v5 = vadd.f32 %v311_v44, %v286_v58  ;;  %v315_v4 = vadd.f32 %v312_v14, %v287_v36  ;;  %994 = vrot.lane.b32.xlu0 %v988_v56, %s1776_s7  ;;  %1280 = vrot.lane.b32.xlu1 %v1272_v33, %s1776_s7  ;;  %v2749_v14 = vld [vmem:[#allocation14_spill] sm:$0xff] }
 0x1bc   : > { %v990_v18 = vmul.f32 %v2325_v55, %v2748_v34  ;;  %v1294_v29 = vmul.f32 %v2331_v49, %v2111_v20  ;;  %v1295_v15 = vmul.f32 %v2331_v49, %v2075_v45  ;;  %v1094_v25 = vpop.permute.xlu1 %1093  ;;  %v1012_v27 = vmul.f32 %v2337_v41, %v2749_v14 }
 0x1bd   : > { %v341_v9 = vadd.f32 %v338_v22, %v313_v2  ;;  %v342_v31 = vadd.f32 %v339_v42, %v314_v5  ;;  %v343_v36 = vadd.f32 %v340_v39, %v315_v4  ;;  %v1096_v44 = vmul.f32 %v1094_v25, %v2021_v13  ;;  %v2753_v2 = vld [vmem:[#allocation15_spill] sm:$0xff] }
 0x1be   : > { %v1106_v33 = vmul.f32 %v2357_v61, %v2037_v24  ;;  %v1097_v55 = vmul.f32 %v1094_v25, %v2018_v12  ;;  %v1098_v8 = vmul.f32 %v1094_v25, %v2032_v21  ;;  %v2440_v20 = vpop.permute.xlu0 %1156  ;;  %v1107_v13 = vmul.f32 %v2357_v61, %v2029_v19  ;;  %v2755_v25 = vld [vmem:[#allocation22_spill] sm:$0xff] }
 0x1bf   : > { %v369_v23 = vadd.f32 %v366_v53, %v341_v9  ;;  %v370_v45 = vadd.f32 %v367_v28, %v342_v31  ;;  %v371_v40 = vadd.f32 %v368_v17, %v343_v36  ;;  %v1099_v22 = vadd.f32 %v1096_v44, %v1089_v52  ;;  %998 = vrot.lane.b32.xlu0 %v990_v18, %s1776_s7 }
 0x1c0   : > { %v1108_v42 = vmul.f32 %v2357_v61, %v2052_v32  ;;  %v1100_v39 = vadd.f32 %v1097_v55, %v1090_v60  ;;  %v1101_v24 = vadd.f32 %v1098_v8, %v1091_v1  ;;  %996 = vrot.lane.b32.xlu1 %v989_v11, %s1776_s7  ;;  %v1296_v60 = vmul.f32 %v2331_v49, %v2748_v34  ;;  %v2756_v34 = vld [vmem:[#allocation11_spill] sm:$0xff]  ;;  %v2758_v8 = vld [vmem:[#allocation24_spill] sm:$0xff] }
 0x1c1   : > { %v394_v12 = vadd.f32 %v389_v38, %v369_v23  ;;  %v395_v21 = vadd.f32 %v390_v6, %v370_v45  ;;  %v396_v63 = vadd.f32 %v2176_v54, %v371_v40  ;;  %v1114_v53 = vpop.permute.xlu1 %1113  ;;  %v1109_v28 = vadd.f32 %v1106_v33, %v1099_v22  ;;  %v2750_v54 = vld [vmem:[#allocation20_spill] sm:$0xff]  ;;  %v2751_v6 = vld [vmem:[#allocation19_spill] sm:$0xff]  ;;  %v2759_v23 = vld [vmem:[#allocation26_spill] sm:$0xff] }
 0x1c2   : > { %v1116_v17 = vmul.f32 %v1114_v53, %v2056_v35  ;;  %v1117_v48 = vmul.f32 %v1114_v53, %v2042_v26  ;;  %v1118_v0 = vmul.f32 %v1114_v53, %v2068_v43  ;;  %v1161_v19 = vpop.permute.xlu0 %1160  ;;  %v1110_v16 = vadd.f32 %v1107_v13, %v1100_v39  ;;  %v2752_v35 = vld [vmem:[#allocation21_spill] sm:$0xff]  ;;  %v2760_v40 = vld [vmem:[#allocation28_spill] sm:$0xff] }
 0x1c3   : > { %v418_v32 = vadd.f32 %v2392_v59, %v394_v12  ;;  %v419_v1 = vadd.f32 %v2397_v50, %v395_v21  ;;  %v420_v61 = vadd.f32 %v2190_v47, %v396_v63  ;;  %1302 = vrot.lane.b32.xlu0 %v1295_v15, %s1776_s7  ;;  %v1111_v38 = vadd.f32 %v1108_v42, %v1101_v24  ;;  %v2761_v21 = vld [vmem:[#allocation27_spill] sm:$0xff]  ;;  %v2762_v63 = vld [vmem:[#allocation30_spill] sm:$0xff] }
 0x1c4   : > { %v461_v3 = vsel %vm388_vm2, %v2751_v6, %v2750_v54  ;;  %v462_v26 = vsel %vm388_vm2, %v2750_v54, %v2752_v35  ;;  %1300 = vrot.lane.b32.xlu1 %v1294_v29, %s1776_s7  ;;  %v1119_v43 = vadd.f32 %v1116_v17, %v1109_v28  ;;  %v1120_v56 = vadd.f32 %v1117_v48, %v1110_v16  ;;  %v2763_v28 = vld [vmem:[#allocation31_spill] sm:$0xff] }
 0x1c5   : > { %v442_v59 = vadd.f32 %v2402_v62, %v418_v32  ;;  %v443_v50 = vadd.f32 %v438_v51, %v419_v1  ;;  %v444_v47 = vadd.f32 %v2209_v7, %v420_v61  ;;  %v1133_v58 = vpop.permute.xlu1 %1132  ;;  %v1121_v52 = vadd.f32 %v1118_v0, %v1111_v38  ;;  %v2754_v51 = vld [vmem:[#allocation25_spill] sm:$0xff] }
 0x1c6   : > { %v1014_v5 = vmul.f32 %v2337_v41, %v2753_v2  ;;  %v1138_v4 = vsel %vm388_vm2, %v1133_v58, %v2421_v57  ;;  %v1143_v11 = vadd.f32 %v1133_v58, %v1119_v43  ;;  %v866_v18 = vpop.permute.xlu0 %865  ;;  %v486_v49 = vsel %vm388_vm2, %v2755_v25, %v2754_v51  ;;  %v2765_v0 = vld [vmem:[#allocation33_spill] sm:$0xff]  ;;  %v2768_v58 = vld [vmem:[#allocation36_spill] sm:$0xff] }
 0x1c7   : > { %v1144_v29 = vadd.f32 %v1138_v4, %v1120_v56  ;;  %v2472_v15 = vadd.f32 %v866_v18, %v2308_v37  ;;  %1018 = vrot.lane.b32.xlu0 %v1012_v27, %s1776_s7  ;;  %v468_v7 = vadd.f32 %v2752_v35, %v444_v47  ;;  %v467_v62 = vadd.f32 %v462_v26, %v443_v50  ;;  %v2757_v37 = vld [vmem:[#allocation23_spill] sm:$0xff]  ;;  %v2767_v47 = vld [vmem:[#allocation32_spill] sm:$0xff]  ;;  %v2770_v4 = vld [vmem:[#allocation34_spill] sm:$0xff] }
 0x1c8   : > { %v1013_v9 = vmul.f32 %v2337_v41, %v2756_v34  ;;  %1304 = vrot.lane.b32.xlu1 %v1296_v60, %s1776_s7  ;;  %v1167_v31 = vadd.f32 %v2440_v20, %v1143_v11  ;;  %v466_v36 = vadd.f32 %v461_v3, %v442_v59  ;;  %v485_v44 = vsel %vm388_vm2, %v2757_v37, %v2755_v25  ;;  %v2766_v56 = vld [vmem:[#allocation35_spill] sm:$0xff]  ;;  %v2769_v60 = vld [vmem:[#allocation37_spill] sm:$0xff]  ;;  %v2771_v11 = vld [vmem:[#allocation38_spill] sm:$0xff] }
 0x1c9   : > { %v1137_v27 = vpop.permute.xlu1 %1136  ;;  %v492_v33 = vadd.f32 %v2754_v51, %v468_v7  ;;  %v491_v55 = vadd.f32 %v486_v49, %v467_v62  ;;  %v528_v45 = vsel %vm527_vm1, %v2759_v23, %v2758_v8  ;;  %v529_v41 = vsel %vm527_vm1, %v2758_v8, %v2760_v40  ;;  %v2772_v25 = vld [vmem:[#allocation39_spill] sm:$0xff]  ;;  %v2773_v40 = vld [vmem:[#allocation16_spill] sm:$0xff] }
 0x1ca   : > { %v1139_v22 = vsel %vm388_vm2, %v2421_v57, %v1137_v27  ;;  %v490_v13 = vadd.f32 %v485_v44, %v466_v36  ;;  %v1183_v39 = vpop.permute.xlu0 %1182  ;;  %v570_v53 = vsel %vm527_vm1, %v2762_v63, %v2761_v21  ;;  %v571_v17 = vsel %vm527_vm1, %v2761_v21, %v2763_v28  ;;  %v2764_v57 = vld [vmem:[#allocation29_spill] sm:$0xff] }
 0x1cb   : > { %v1145_v42 = vadd.f32 %v1139_v22, %v1121_v52  ;;  %1022 = vrot.lane.b32.xlu0 %v1014_v5, %s1776_s7  ;;  %v535_v24 = vadd.f32 %v529_v41, %v492_v33  ;;  %v534_v12 = vadd.f32 %v528_v45, %v491_v55  ;;  %v612_v16 = vsel %vm527_vm1, %v2765_v0, %v2764_v57  ;;  %v2774_v41 = vld [vmem:[#allocation40_spill] sm:$0xff] }
 0x1cc   : > { %1020 = vrot.lane.b32.xlu1 %v1013_v9, %s1776_s7  ;;  %v533_v48 = vadd.f32 %v2759_v23, %v490_v13  ;;  %v1318_v38 = vmul.f32 %v2333_v30, %v2749_v14  ;;  %v654_v52 = vsel %vm527_vm1, %v2768_v58, %v2767_v47  ;;  %v1320_v45 = vmul.f32 %v2333_v30, %v2753_v2 }
 0x1cd   : > { %v1159_v32 = vpop.permute.xlu1 %1158  ;;  %v577_v1 = vadd.f32 %v571_v17, %v535_v24  ;;  %v576_v61 = vadd.f32 %v570_v53, %v534_v12  ;;  %v2775_v24 = vld [vmem:[#allocation12_spill] sm:$0xff]  ;;  %v2776_v12 = vld [vmem:[#allocation17_spill] sm:$0xff] }
 0x1ce   : > { %v1162_v54 = vsel %vm388_vm2, %v2440_v20, %v1159_v32  ;;  %v1163_v6 = vsel %vm388_vm2, %v1159_v32, %v1161_v19  ;;  %v575_v3 = vadd.f32 %v2762_v63, %v533_v48  ;;  %v2513_v43 = vpop.permute.xlu0 %894  ;;  %v2777_v17 = vld [vmem:[#allocation41_spill] sm:$0xff] }
 0x1cf   : > { %v1168_v35 = vadd.f32 %v1162_v54, %v1144_v29  ;;  %v1169_v26 = vadd.f32 %v1163_v6, %v1145_v42  ;;  %v619_v59 = vadd.f32 %v2766_v56, %v577_v1  ;;  %v618_v50 = vadd.f32 %v612_v16, %v576_v61  ;;  %v1390_v16 = vld [vmem:[%s2672_s2] sm:$0xff] }
 0x1d0   : > { %1324 = vrot.lane.b32.xlu1 %v1318_v38, %s1776_s7  ;;  %v617_v14 = vadd.f32 %v2765_v0, %v575_v3  ;;  %v695_v29 = vsel %vm527_vm1, %v2771_v11, %v2770_v4  ;;  %v1343_v48 = vmul.f32 %v2777_v17, %v2775_v24  ;;  %v1344_v32 = vmul.f32 %v2777_v17, %v2776_v12 }
 0x1d1   : > { %v864_v20 = vpop.permute.xlu1 %863  ;;  %v661_v19 = vadd.f32 %v2769_v60, %v619_v59  ;;  %v660_v5 = vadd.f32 %v654_v52, %v618_v50 }
 0x1d2   : > { %v867_v7 = vsel %vm388_vm2, %v864_v20, %v866_v18  ;;  %v2527_v62 = vadd.f32 %v864_v20, %v2311_v46  ;;  %v659_v36 = vadd.f32 %v2768_v58, %v617_v14  ;;  %v1205_v44 = vpop.permute.xlu0 %1204  ;;  %v1319_v18 = vmul.f32 %v2333_v30, %v2756_v34 }
 0x1d3   : > { %v872_v51 = vadd.f32 %v867_v7, %v2313_v10  ;;  %v702_v49 = vadd.f32 %v2772_v25, %v661_v19  ;;  %v701_v9 = vadd.f32 %v695_v29, %v660_v5  ;;  %v1038_v30 = vmul.f32 %v2774_v41, %v2776_v12 }
 0x1d4   : > { %v700_v55 = vadd.f32 %v2771_v11, %v659_v36  ;;  %v902_v36 = vadd.f32 %v2513_v43, %v2527_v62 }
 0x1d5   : > { %720 = vrot.lane.b32.xlu1 %v702_v49, %s1793_s8  ;;  %718 = vrot.lane.b32.xlu0 %v701_v9, %s1793_s8  ;;  %v1181_v37 = vpop.permute.xlu1 %1180 }
 0x1d6   : > { %v1186_v27 = vsel %vm388_vm2, %v1181_v37, %v1183_v39  ;;  %v1191_v33 = vadd.f32 %v1181_v37, %v1167_v31  ;;  %v1036_v31 = vmul.f32 %v2774_v41, %v2773_v40  ;;  %v1209_v21 = vpop.permute.xlu0 %1208 }
 0x1d7   : > { %v1192_v46 = vadd.f32 %v1186_v27, %v1168_v35 }
 0x1d8   : > { %v2536_v10 = vadd.f32 %v1205_v44, %v1191_v33 }
 0x1d9   : > { %1326 = vrot.lane.b32.xlu0 %v1319_v18, %s1776_s7  ;;  %v1185_v8 = vpop.permute.xlu1 %1184  ;;  %716 = vrot.lane.b32.xlu1 %v700_v55, %s1793_s8 }
 0x1da   : > { %v1187_v23 = vsel %vm388_vm2, %v1183_v39, %v1185_v8  ;;  %v1037_v39 = vmul.f32 %v2774_v41, %v2775_v24 }
 0x1db   : > { %v1193_v22 = vadd.f32 %v1187_v23, %v1169_v26 }
 0x1dd   : > { %1042 = vrot.lane.b32.xlu0 %v1036_v31, %s1776_s7  ;;  %v897_v34 = vpop.permute.xlu1 %896  ;;  %1328 = vrot.lane.b32.xlu1 %v1320_v45, %s1776_s7 }
 0x1de   : > { %v898_v13 = vsel %vm388_vm2, %v2513_v43, %v897_v34  ;;  %v904_v42 = vadd.f32 %v897_v34, %v2472_v15  ;;  %v1342_v15 = vmul.f32 %v2777_v17, %v2773_v40 }
 0x1df   : > { %v903_v2 = vadd.f32 %v898_v13, %v872_v51 }
 0x1e1   : > { %1046 = vrot.lane.b32.xlu0 %v1038_v30, %s1776_s7  ;;  %v1207_v63 = vpop.permute.xlu1 %1206  ;;  %1044 = vrot.lane.b32.xlu1 %v1037_v39, %s1776_s7 }
 0x1e2   : > { %v1210_v53 = vsel %vm388_vm2, %v1205_v44, %v1207_v63  ;;  %v1211_v28 = vsel %vm388_vm2, %v1207_v63, %v1209_v21 }
 0x1e3   : > { %v1216_v57 = vadd.f32 %v1210_v53, %v1192_v46  ;;  %v2561_v0 = vadd.f32 %v1211_v28, %v1193_v22 }
 0x1e5   : > { %1350 = vrot.lane.b32.xlu0 %v1343_v48, %s1776_s7  ;;  %1348 = vrot.lane.b32.xlu1 %v1342_v15, %s1776_s7 }
 0x1e9   : > { %1393 = vperm.xlu0 %1642, %v1390_v16   ;;  %1352 = vrot.lane.b32.xlu1 %v1344_v32, %s1776_s7 }
 0x20d   : > { %v928_v1 = vpop.permute.xlu0 %927  ;;  %v926_v61 = vpop.permute.xlu1 %925 }
 0x20e   : > { %v933_v37 = vadd.f32 %v926_v61, %v902_v36  ;;  %v929_v33 = vsel %vm388_vm2, %v926_v61, %v928_v1  ;;  %v935_v40 = vadd.f32 %v928_v1, %v904_v42 }
 0x20f   : > { %v934_v41 = vadd.f32 %v929_v33, %v903_v2 }
 0x211   : > { %v1231_v38 = vpop.permute.xlu0 %1230  ;;  %v1229_v54 = vpop.permute.xlu1 %1228 }
 0x212   : > { %v1234_v55 = vsel %vm388_vm2, %v1229_v54, %v1231_v38  ;;  %v1239_v24 = vadd.f32 %v1229_v54, %v2536_v10 }
 0x213   : > { %v1240_v39 = vadd.f32 %v1234_v55, %v1216_v57 }
 0x215   : > { %v947_v6 = vpop.permute.xlu0 %946  ;;  %v1233_v3 = vpop.permute.xlu1 %1232 }
 0x216   : > { %v957_v18 = vadd.f32 %v947_v6, %v933_v37  ;;  %v1235_v53 = vsel %vm388_vm2, %v1231_v38, %v1233_v3 }
 0x219   : > { %v951_v35 = vpop.permute.xlu0 %950  ;;  %v949_v26 = vpop.permute.xlu1 %948 }
 0x21a   : > { %v952_v8 = vsel %vm527_vm1, %v947_v6, %v949_v26  ;;  %v953_v23 = vsel %vm527_vm1, %v949_v26, %v951_v35  ;;  %v1241_v35 = vadd.f32 %v1235_v53, %v2561_v0 }
 0x21b   : > { %v958_v12 = vadd.f32 %v952_v8, %v934_v41  ;;  %v959_v30 = vadd.f32 %v953_v23, %v935_v40  ;;  %v2778_v41 = vld [vmem:[#allocation9_spill] sm:$0xff] }
 0x21d   : > { %v1255_v56 = vpop.permute.xlu0 %1254  ;;  %v1253_v59 = vpop.permute.xlu1 %1252 }
 0x21e   : > { %v1258_v21 = vsel %vm527_vm1, %v1253_v59, %v1255_v56  ;;  %v1263_v28 = vadd.f32 %v1253_v59, %v1239_v24 }
 0x21f   : > { %v1264_v61 = vadd.f32 %v1258_v21, %v1240_v39 }
 0x221   : > { %v971_v50 = vpop.permute.xlu0 %970  ;;  %v1257_v47 = vpop.permute.xlu1 %1256 }
 0x222   : > { %v981_v45 = vadd.f32 %v971_v50, %v957_v18  ;;  %v1259_v26 = vsel %vm527_vm1, %v1255_v56, %v1257_v47 }
 0x223   : > { %v1265_v47 = vadd.f32 %v1259_v26, %v1241_v35 }
 0x225   : > { %v975_v58 = vpop.permute.xlu0 %974  ;;  %v973_v52 = vpop.permute.xlu1 %972 }
 0x226   : > { %v976_v31 = vsel %vm527_vm1, %v971_v50, %v973_v52  ;;  %v977_v22 = vsel %vm527_vm1, %v973_v52, %v975_v58 }
 0x227   : > { %v982_v17 = vadd.f32 %v976_v31, %v958_v12  ;;  %v983_v15 = vadd.f32 %v977_v22, %v959_v30  ;;  %v2779_v22 = vld [vmem:[#allocation10_spill] sm:$0xff] }
 0x229   : > { %v1279_v14 = vpop.permute.xlu0 %1278  ;;  %v1277_v20 = vpop.permute.xlu1 %1276 }
 0x22a   : > { %v1282_v32 = vsel %vm527_vm1, %v1277_v20, %v1279_v14  ;;  %v1287_v38 = vadd.f32 %v1277_v20, %v1263_v28 }
 0x22b   : > { %v1288_v59 = vadd.f32 %v1282_v32, %v1264_v61 }
 0x22d   : > { %v995_v60 = vpop.permute.xlu0 %994  ;;  %v1281_v19 = vpop.permute.xlu1 %1280 }
 0x22e   : > { %v1005_v34 = vadd.f32 %v995_v60, %v981_v45  ;;  %v1283_v50 = vsel %vm527_vm1, %v1279_v14, %v1281_v19 }
 0x22f   : > { %v1289_v36 = vadd.f32 %v1283_v50, %v1265_v47 }
 0x231   : > { %v999_v5 = vpop.permute.xlu0 %998 }
 0x232   : > { %v997_v4 = vpop.permute.xlu1 %996 }
 0x233   : > { %v1000_v42 = vsel %vm527_vm1, %v995_v60, %v997_v4  ;;  %v1001_v2 = vsel %vm527_vm1, %v997_v4, %v999_v5 }
 0x234   : > { %v1006_v54 = vadd.f32 %v1000_v42, %v982_v17  ;;  %v1007_v6 = vadd.f32 %v1001_v2, %v983_v15 }
 0x235   : > { %v2571_v29 = vpop.permute.xlu0 %1302 }
 0x236   : > { %v1301_v11 = vpop.permute.xlu1 %1300 }
 0x237   : > { %v1306_v3 = vsel %vm527_vm1, %v1301_v11, %v2571_v29  ;;  %v1311_v4 = vadd.f32 %v1301_v11, %v1287_v38 }
 0x238   : > { %v1312_v20 = vadd.f32 %v1306_v3, %v1288_v59 }
 0x239   : > { %v1019_v51 = vpop.permute.xlu0 %1018 }
 0x23a   : > { %v2573_v7 = vpop.permute.xlu1 %1304  ;;  %v1029_v63 = vadd.f32 %v1019_v51, %v1005_v34  ;;  %v193_v34 = vand.u32 15, %v2779_v22 }
 0x23b   : > { %v1307_v14 = vsel %vm527_vm1, %v2571_v29, %v2573_v7 }
 0x23c   : > { %v1313_v55 = vadd.f32 %v1307_v14, %v1289_v36  ;;  %vm704_vm8 = vcmp.ge.s32.totalorder %v193_v34, 1  ;;  %vm1365_vm9 = vcmp.lt.s32.totalorder %v193_v34, 15 }
 0x23d   : > { %v1023_v49 = vpop.permute.xlu0 %1022 }
 0x23e   : > { %v1021_v25 = vpop.permute.xlu1 %1020 }
 0x23f   : > { %v1024_v10 = vsel %vm527_vm1, %v1019_v51, %v1021_v25  ;;  %v1025_v57 = vsel %vm527_vm1, %v1021_v25, %v1023_v49 }
 0x240   : > { %v1030_v58 = vadd.f32 %v1024_v10, %v1006_v54  ;;  %v1031_v52 = vadd.f32 %v1025_v57, %v1007_v6 }
 0x242   : > { %v2575_v9 = vpop.permute.xlu1 %1324 }
 0x243   : > { %v1335_v19 = vadd.f32 %v2575_v9, %v1311_v4 }
 0x247   : > { %v719_v44 = vpop.permute.xlu0 %718  ;;  %v721_v27 = vpop.permute.xlu1 %720 }
 0x248   : > { %v2581_v46 = vsel %vm722_vm3, %v719_v44, %v721_v27 }
 0x249   : > { %v728_v28 = vsel %vm704_vm8, %v2581_v46, 0.0 }
 0x24b   : > { %v1327_v43 = vpop.permute.xlu0 %1326  ;;  %v717_v62 = vpop.permute.xlu1 %716 }
 0x24c   : > { %v2589_v13 = vsel %vm722_vm3, %v717_v62, %v719_v44  ;;  %v1330_v51 = vsel %vm527_vm1, %v2575_v9, %v1327_v43  ;;  %v192_v62 = vand.u32 15, %v2778_v41 }
 0x24d   : > { %v1336_v37 = vadd.f32 %v1330_v51, %v1312_v20 }
 0x24e   : > { %vm703_vm5 = vcmp.ge.s32.totalorder %v192_v62, 1  ;;  %vm1364_vm7 = vcmp.lt.s32.totalorder %v192_v62, 15 }
 0x24f   : > { %v1043_v48 = vpop.permute.xlu0 %1042  ;;  %v1329_v16 = vpop.permute.xlu1 %1328  ;;  %v727_v39 = vsel %vm703_vm5, %v2589_v13, 0.0 }
 0x250   : > { %v1053_v1 = vadd.f32 %v1043_v48, %v1029_v63  ;;  %v1331_v27 = vsel %vm527_vm1, %v1327_v43, %v1329_v16 }
 0x251   : > { %v1337_v23 = vadd.f32 %v1331_v27, %v1313_v55 }
 0x252   : > { %1059 = vrot.lane.b32.xlu1 %v1053_v1, %s1794_s17 }
 0x253   : > { %v1047_v60 = vpop.permute.xlu0 %1046  ;;  %v1045_v5 = vpop.permute.xlu1 %1044 }
 0x254   : > { %v1048_v0 = vsel %vm527_vm1, %v1043_v48, %v1045_v5  ;;  %v1049_v56 = vsel %vm527_vm1, %v1045_v5, %v1047_v60 }
 0x255   : > { %v1054_v25 = vadd.f32 %v1048_v0, %v1030_v58  ;;  %v1055_v49 = vadd.f32 %v1049_v56, %v1031_v52 }
 0x257   : > { %v1351_v11 = vpop.permute.xlu0 %1350  ;;  %1063 = vrot.lane.b32.xlu0 %v1055_v49, %s1794_s17  ;;  %1061 = vrot.lane.b32.xlu1 %v1054_v25, %s1794_s17  ;;  %v1349_v44 = vpop.permute.xlu1 %1348 }
 0x258   : > { %v1354_v33 = vsel %vm527_vm1, %v1349_v44, %v1351_v11  ;;  %v1359_v18 = vadd.f32 %v1349_v44, %v1335_v19 }
 0x259   : > { %v1360_v8 = vadd.f32 %v1354_v33, %v1336_v37 }
 0x25b   : > { %1375 = vrot.lane.b32.xlu1 %v1359_v18, %s1795_s19  ;;  %1377 = vrot.lane.b32.xlu0 %v1360_v8, %s1795_s19  ;;  %v1353_v29 = vpop.permute.xlu1 %1352 }
 0x25c   : > { %v1355_v7 = vsel %vm527_vm1, %v1351_v11, %v1353_v29 }
 0x25d   : > { %v1361_v9 = vadd.f32 %v1355_v7, %v1337_v23 }
 0x25f   : > { %1379 = vrot.lane.b32.xlu1 %v1361_v9, %s1795_s19 }
 0x268   : > { %v1394_v40 = vpop.permute.xlu0 %1393 }
 0x2c4   : > { %v1060_v45 = vpop.permute.xlu1 %1059 }
 0x2c9   : > { %v1064_v43 = vpop.permute.xlu0 %1063  ;;  %v1062_v31 = vpop.permute.xlu1 %1061 }
 0x2ca   : > { %v1066_v24 = vsel %vm1065_vm4, %v1060_v45, %v1062_v31  ;;  %v1067_v2 = vsel %vm1065_vm4, %v1062_v31, %v1064_v43 }
 0x2cb   : > { %v1070_v21 = vadd.f32 %v1066_v24, %v727_v39  ;;  %v1071_v15 = vadd.f32 %v1067_v2, %v728_v28 }
 0x2cd   : > { %v1378_v12 = vpop.permute.xlu0 %1377  ;;  %v1376_v30 = vpop.permute.xlu1 %1375 }
 0x2ce   : > { %v1382_v42 = vsel %vm1381_vm6, %v1376_v30, %v1378_v12 }
 0x2cf   : > { %v1386_v63 = vsel %vm1364_vm7, %v1382_v42, 0.0 }
 0x2d0   : > { %v1388_v53 = vadd.f32 %v1386_v63, %v1070_v21 }
 0x2d1   : > { %v1380_v17 = vpop.permute.xlu1 %1379 }
 0x2d2   : > { %v1396_v48 = vadd.f32 %v1394_v40, %v1388_v53  ;;  %v1383_v13 = vsel %vm1381_vm6, %v1378_v12, %v1380_v17 }
 0x2d3   : > { %v1387_v16 = vsel %vm1365_vm9, %v1383_v13, 0.0 }
 0x2d4   : > { %v1389_v32 = vadd.f32 %v1387_v16, %v1071_v15  ;;  %1398 = vst [vmem:[%s186_s26] sm:$0xff] %v1396_v48 }
 0x2d6   : > { %v1397_v10 = vadd.f32 %v1394_v40, %v1389_v32 }
 0x2d8   : > { %1399 = vst [vmem:[%s186_s26 + $0x8] sm:$0xff] %v1397_v10 }
 0x2d9   : > { %1688 = shalt.err (!%p1685_p4)
}
 0x2da   : > { %s1689_s29 = scalar_lea.hbm %s2626_s5, 256  ;;  %s1693_s10 = scalar_lea.hbm %s2673_s3, 512 }
 0x2db   : > { %p1690_p5 = scmp.ne.s32.totalorder %s2626_s5, %s1689_s29  ;;  %p1694_p0 = scmp.lt.u32.totalorder %s2626_s5, %s2673_s3 }
 0x2dc   : > { %p1695_p1 = scmp.lt.u32.totalorder %s1693_s10, %s1689_s29  ;;  %p1697_p6 = scmp.lt.u32.totalorder %s1689_s29, %s2626_s5 }
 0x2dd   : > { %p1691_p8 = pnand %p1690_p5, %p2780_p11 }
 0x2de   : > { %p1696_p3 = por %p1695_p1, %p1694_p0 }
 0x2df   : > { %p1692_p9 = pneg %p1691_p8 }
 0x2e0   : > { %p1698_p12 = por %p1697_p6, %p1696_p3 }
 0x2e2   : > { %p1699_p13 = pnand %p1698_p12, %p1692_p9 }
 0x2e4   : > { %1702 = shalt.err (!%p1699_p13)
}
 0x2e5   : > { %1503 = dma.vmem_to_hbm [thread:$0]  (%p2780_p11), %s2628_s27, 256, %s2626_s5, %s1401_s9  }
 0x2e6 PF: > { %s1427_s19 = sand.u32 1, %s1729_s12   ;;  %p2781_p7 = scmp.ne.s32.totalorder %s2710_s25, 0 }
 0x2e7   : > { %p2782_p10 = scmp.ge.s32.totalorder %s1741_s15, 2  ;;  %s1428_s20 = scalar_lea.sflag [#allocation5], %s1427_s19 }
 0x2e9   : > { %p1510_p2 = pnand %p2782_p10, %p2781_p7 }
 0x2eb   : > { %1724 = dma.done.wait (!%p1510_p2), %s1428_s20, 256  }
 0x2ec   : > { %1726 = vsyncadd (!%p1510_p2), %s1428_s20, 4294967040  ;;  %p16_p4 = scmp.ge.s32.totalorder %s1842_s18, 4   ;;  %s2783_s12 = smov %s1733_s13 }
 0x2ed   : > { %s2784_s13 = smov %s1737_s14  ;;  %s2785_s14 = smov %s1854_s21 }
 0x2ee   : > { %s2786_s15 = smov %s1842_s18  ;;  %18 = sbr.rel (!%p16_p4) target bundleno = 5 (0x5), region = 86 }
 0x2f5   :  { %1433 = vsyncpa [#allocation4], 1 }
 0x2f6   :  { %1435 = vsyncpa [#allocation4 + $0x1], 1 }
 0x2f7   :  { %1436 = vsyncpa [#allocation5], 1 }
 0x2f8   :  { %1438 = vsyncpa [#allocation5 + $0x1], 1 }

</bundles_post_ra>
